<compile_context>
chip_gen: v7x
topology: tpu7x:2x2x1
jax: 0.10.0
libtpu: 0.0.40
codegen_flags: <defaults>
</compile_context>

<pallas_src>
import jax
import jax.numpy as jnp
from jax.experimental import pallas as pl
from jax.experimental.pallas import tpu as pltpu

# Model dims (MNIST_MLP): 784 -> 512 -> 512 -> 256
D_IN = 28 * 28   # 784
D_H = 512
D_OUT = 256


def mlp_kernel(x_ref, w1_ref, b1_ref, w2_ref, b2_ref, w3_ref, b3_ref, o_ref):
    # x: (tb, 784) bf16, already mask-multiplied in the wrapper.
    # weights: (in, out) bf16 resident in VMEM; biases (1, out) f32.
    x = x_ref[...]
    h1 = jnp.dot(x, w1_ref[...], preferred_element_type=jnp.float32) + b1_ref[...]
    h1 = jnp.maximum(h1, 0.0).astype(jnp.bfloat16)               # ReLU
    h2 = jnp.dot(h1, w2_ref[...], preferred_element_type=jnp.float32) + b2_ref[...]
    h2 = jnp.maximum(h2, 0.0).astype(jnp.bfloat16)               # ReLU
    o_ref[...] = (jnp.dot(h2, w3_ref[...], preferred_element_type=jnp.float32)
                  + b3_ref[...]).astype(o_ref.dtype)


def prepare_params(params, weight_dtype=jnp.bfloat16):
    """One-time prep: PyTorch (out, in) f32 -> kernel (in, out) bf16, biases (1, out) f32.

    Do this once per model, NOT per forward call.
    """
    w1, b1, w2, b2, w3, b3 = params
    return (
        w1.T.astype(weight_dtype), b1[None, :].astype(jnp.float32),
        w2.T.astype(weight_dtype), b2[None, :].astype(jnp.float32),
        w3.T.astype(weight_dtype), b3[None, :].astype(jnp.float32),
    )


def mnist_mlp_forward(x_nchw, mask, prepared, *, tile_b=256):
    """x_nchw: (B, 1, 28, 28), mask: (B, 784) {0,1}, prepared = prepare_params(...)."""
    B = x_nchw.shape[0]
    w1t, b1, w2t, b2, w3t, b3 = prepared

    # nn.Flatten + mask multiply fused in the wrapper; bf16 feed for the MXU.
    # (Exact for a {0,1} mask: same rounding point as multiplying then casting
    #  inside the kernel, which is what the previous version did anyway.)
    x_flat = x_nchw.reshape(B, D_IN).astype(jnp.float32)
    xm = (x_flat * mask.reshape(B, D_IN).astype(jnp.float32)).astype(jnp.bfloat16)

    # Batch tile: multiple of 16 (bf16 sublane packing); pad batch only (no K pad).
    tb = int(min(tile_b, max(16, ((B + 15) // 16) * 16)))
    b_pad = ((B + tb - 1) // tb) * tb
    if b_pad != B:
        xm = jnp.pad(xm, ((0, b_pad - B), (0, 0)))

    row_spec = pl.BlockSpec((tb, D_IN), lambda i: (i, 0))
    out_spec = pl.BlockSpec((tb, D_OUT), lambda i: (i, 0))

    def const(shape):
        # Constant block index + single buffer: weights/biases DMA'd once,
        # VMEM-resident across all grid steps, no wasted second buffer.
        return pl.BlockSpec(shape, lambda i: (0, 0), pipeline_mode=pl.Buffered(1))

    flops = 2 * b_pad * (D_IN * D_H + D_H * D_H + D_H * D_OUT)
    bytes_weights = 2 * (D_IN * D_H + D_H * D_H + D_H * D_OUT) \
        + 4 * (2 * D_H + D_OUT)                       # bf16 weights + f32 biases
    bytes_act = 2 * b_pad * D_IN + 4 * b_pad * D_OUT  # bf16 in, f32 out

    out = pl.pallas_call(
        mlp_kernel,
        out_shape=jax.ShapeDtypeStruct((b_pad, D_OUT), jnp.float32),
        grid=(b_pad // tb,),
        in_specs=[
            row_spec,               # x * mask (bf16)
            const((D_IN, D_H)),     # w1 (bf16, resident)
            const((1, D_H)),        # b1
            const((D_H, D_H)),      # w2
            const((1, D_H)),        # b2
            const((D_H, D_OUT)),    # w3
            const((1, D_OUT)),      # b3
        ],
        out_specs=out_spec,
        compiler_params=pltpu.CompilerParams(
            dimension_semantics=("parallel",)),
        cost_estimate=pl.CostEstimate(
            flops=flops,
            transcendentals=0,
            bytes_accessed=bytes_weights + bytes_act),
    )(xm, w1t, b1, w2t, b2, w3t, b3)
    return out[:B]


def init_params(key):
    """Deterministic synthetic params with PyTorch nn.Linear shapes (out, in)."""
    k1, k2, k3, k4, k5, k6 = jax.random.split(key, 6)

    def uinit(k, shape, fan_in):
        bound = 1.0 / jnp.sqrt(fan_in)
        return jax.random.uniform(k, shape, jnp.float32, -bound, bound)

    w1 = uinit(k1, (D_H, D_IN), D_IN)
    b1 = uinit(k2, (D_H,), D_IN)
    w2 = uinit(k3, (D_H, D_H), D_H)
    b2 = uinit(k4, (D_H,), D_H)
    w3 = uinit(k5, (D_OUT, D_H), D_H)
    b3 = uinit(k6, (D_OUT,), D_H)
    return (w1, b1, w2, b2, w3, b3)


def reference_forward(x_nchw, mask, params):
    """Pure-JAX f32 reference replicating the PyTorch module exactly."""
    w1, b1, w2, b2, w3, b3 = params
    x = x_nchw.reshape(x_nchw.shape[0], -1) * mask
    x = jnp.maximum(x @ w1.T + b1, 0.0)
    x = jnp.maximum(x @ w2.T + b2, 0.0)
    return x @ w3.T + b3


def matched_reference(x_nchw, mask, prepared):
    """Pure-JAX reference with the same bf16 inputs / f32 accumulation as the kernel."""
    w1t, b1, w2t, b2, w3t, b3 = prepared
    B = x_nchw.shape[0]
    x = (x_nchw.reshape(B, D_IN) * mask).astype(jnp.bfloat16)
    h1 = jnp.maximum(
        jnp.dot(x, w1t, preferred_element_type=jnp.float32) + b1, 0.0).astype(jnp.bfloat16)
    h2 = jnp.maximum(
        jnp.dot(h1, w2t, preferred_element_type=jnp.float32) + b2, 0.0).astype(jnp.bfloat16)
    return jnp.dot(h2, w3t, preferred_element_type=jnp.float32) + b3


if __name__ == "__main__":
    key = jax.random.PRNGKey(0)
    kx, km, kp = jax.random.split(key, 3)

    B = 8
    x = jax.random.normal(kx, (B, 1, 28, 28), jnp.float32)        # MNIST-like NCHW
    mask = (jax.random.uniform(km, (B, D_IN)) > 0.5).astype(jnp.float32)
    params = init_params(kp)
    prepared = prepare_params(params)    # one-time transpose / bf16 cast

    out = jax.block_until_ready(mnist_mlp_forward(x, mask, prepared))
    assert out.shape == (B, D_OUT), out.shape

    # Tight check vs a reference using identical bf16 inputs + f32 accumulation.
    ref_bf16 = matched_reference(x, mask, prepared)
    assert jnp.allclose(out, ref_bf16, atol=2e-3, rtol=2e-3), "mismatch vs bf16 reference"

    # Semantics check vs the f32 PyTorch-style reference (loose: bf16 rounding).
    ref_f32 = reference_forward(x, mask, params)
    assert jnp.allclose(out, ref_f32, atol=5e-2, rtol=5e-2), "mismatch vs f32 reference"

    print("KERNEL_OK")
</pallas_src>

<mosaic_0001>
module attributes {stable_mosaic.version = 11 : i64} {
  func.func @mlp_kernel(%arg0: i32, %arg1: memref<16x784xbf16, #tpu.memory_space<vmem>>, %arg2: memref<784x512xbf16, #tpu.memory_space<vmem>>, %arg3: memref<1x512xf32, #tpu.memory_space<vmem>>, %arg4: memref<512x512xbf16, #tpu.memory_space<vmem>>, %arg5: memref<1x512xf32, #tpu.memory_space<vmem>>, %arg6: memref<512x256xbf16, #tpu.memory_space<vmem>>, %arg7: memref<1x256xf32, #tpu.memory_space<vmem>>, %arg8: memref<16x256xf32, #tpu.memory_space<vmem>>) attributes {dimension_semantics = [#tpu.dimension_semantics<parallel>], iteration_bounds = array<i64: 1>, scalar_prefetch = 0 : i64, scratch_operands = 0 : i64, tpu.core_type = #tpu.core_type<tc>, window_params = [{transform_indices = @transform_0, window_bounds = array<i64: 16, 784>}, {pipeline_mode = #tpu.pipeline_mode<synchronous>, transform_indices = @transform_1, window_bounds = array<i64: 784, 512>}, {pipeline_mode = #tpu.pipeline_mode<synchronous>, transform_indices = @transform_2, window_bounds = array<i64: 1, 512>}, {pipeline_mode = #tpu.pipeline_mode<synchronous>, transform_indices = @transform_3, window_bounds = array<i64: 512, 512>}, {pipeline_mode = #tpu.pipeline_mode<synchronous>, transform_indices = @transform_4, window_bounds = array<i64: 1, 512>}, {pipeline_mode = #tpu.pipeline_mode<synchronous>, transform_indices = @transform_5, window_bounds = array<i64: 512, 256>}, {pipeline_mode = #tpu.pipeline_mode<synchronous>, transform_indices = @transform_6, window_bounds = array<i64: 1, 256>}, {transform_indices = @transform_7, window_bounds = array<i64: 16, 256>}]} {
    %c0 = arith.constant 0 : index
    %c0_0 = arith.constant 0 : index
    %0 = vector.load %arg1[%c0, %c0_0] : memref<16x784xbf16, #tpu.memory_space<vmem>>, vector<16x784xbf16>
    %c0_1 = arith.constant 0 : index
    %c0_2 = arith.constant 0 : index
    %1 = vector.load %arg2[%c0_1, %c0_2] : memref<784x512xbf16, #tpu.memory_space<vmem>>, vector<784x512xbf16>
    %cst = arith.constant dense<0.000000e+00> : vector<16x512xf32>
    %2 = tpu.matmul %0, %1, %cst {dimension_numbers = #tpu.dot_dimension_numbers<[1], [0], [0], [1], [0, 0, 1, 1], [], []>} : vector<16x784xbf16>, vector<784x512xbf16>, vector<16x512xf32> -> vector<16x512xf32>
    %c0_3 = arith.constant 0 : index
    %c0_4 = arith.constant 0 : index
    %3 = vector.load %arg3[%c0_3, %c0_4] : memref<1x512xf32, #tpu.memory_space<vmem>>, vector<1x512xf32>
    %4 = vector.broadcast %3 : vector<1x512xf32> to vector<16x512xf32>
    %5 = arith.addf %2, %4 : vector<16x512xf32>
    %cst_5 = arith.constant 0.000000e+00 : f32
    %6 = vector.broadcast %cst_5 : f32 to vector<16x512xf32>
    %7 = arith.maximumf %5, %6 : vector<16x512xf32>
    %8 = arith.truncf %7 : vector<16x512xf32> to vector<16x512xbf16>
    %c0_6 = arith.constant 0 : index
    %c0_7 = arith.constant 0 : index
    %9 = vector.load %arg4[%c0_6, %c0_7] : memref<512x512xbf16, #tpu.memory_space<vmem>>, vector<512x512xbf16>
    %cst_8 = arith.constant dense<0.000000e+00> : vector<16x512xf32>
    %10 = tpu.matmul %8, %9, %cst_8 {dimension_numbers = #tpu.dot_dimension_numbers<[1], [0], [0], [1], [0, 0, 1, 1], [], []>} : vector<16x512xbf16>, vector<512x512xbf16>, vector<16x512xf32> -> vector<16x512xf32>
    %c0_9 = arith.constant 0 : index
    %c0_10 = arith.constant 0 : index
    %11 = vector.load %arg5[%c0_9, %c0_10] : memref<1x512xf32, #tpu.memory_space<vmem>>, vector<1x512xf32>
    %12 = vector.broadcast %11 : vector<1x512xf32> to vector<16x512xf32>
    %13 = arith.addf %10, %12 : vector<16x512xf32>
    %cst_11 = arith.constant 0.000000e+00 : f32
    %14 = vector.broadcast %cst_11 : f32 to vector<16x512xf32>
    %15 = arith.maximumf %13, %14 : vector<16x512xf32>
    %16 = arith.truncf %15 : vector<16x512xf32> to vector<16x512xbf16>
    %c0_12 = arith.constant 0 : index
    %c0_13 = arith.constant 0 : index
    %17 = vector.load %arg6[%c0_12, %c0_13] : memref<512x256xbf16, #tpu.memory_space<vmem>>, vector<512x256xbf16>
    %cst_14 = arith.constant dense<0.000000e+00> : vector<16x256xf32>
    %18 = tpu.matmul %16, %17, %cst_14 {dimension_numbers = #tpu.dot_dimension_numbers<[1], [0], [0], [1], [0, 0, 1, 1], [], []>} : vector<16x512xbf16>, vector<512x256xbf16>, vector<16x256xf32> -> vector<16x256xf32>
    %c0_15 = arith.constant 0 : index
    %c0_16 = arith.constant 0 : index
    %19 = vector.load %arg7[%c0_15, %c0_16] : memref<1x256xf32, #tpu.memory_space<vmem>>, vector<1x256xf32>
    %20 = vector.broadcast %19 : vector<1x256xf32> to vector<16x256xf32>
    %21 = arith.addf %18, %20 : vector<16x256xf32>
    %c0_17 = arith.constant 0 : index
    %c0_18 = arith.constant 0 : index
    %22 = vector.load %arg8[%c0_17, %c0_18] : memref<16x256xf32, #tpu.memory_space<vmem>>, vector<16x256xf32>
    tpu.vector_store %arg8[%c0_17, %c0_18], %21 {strides = array<i32>} : memref<16x256xf32, #tpu.memory_space<vmem>>, vector<16x256xf32>,
    return
  }
  func.func @transform_0(%arg0: i32) -> (i32, i32) {
    %c0_i32 = arith.constant 0 : i32
    %c0_i32_0 = arith.constant 0 : i32
    return %arg0, %c0_i32 : i32, i32
  }
  func.func @transform_1(%arg0: i32) -> (i32, i32) {
    %c0_i32 = arith.constant 0 : i32
    %c0_i32_0 = arith.constant 0 : i32
    %c0_i32_1 = arith.constant 0 : i32
    return %c0_i32, %c0_i32_0 : i32, i32
  }
  func.func @transform_2(%arg0: i32) -> (i32, i32) {
    %c0_i32 = arith.constant 0 : i32
    %c0_i32_0 = arith.constant 0 : i32
    %c0_i32_1 = arith.constant 0 : i32
    return %c0_i32, %c0_i32_0 : i32, i32
  }
  func.func @transform_3(%arg0: i32) -> (i32, i32) {
    %c0_i32 = arith.constant 0 : i32
    %c0_i32_0 = arith.constant 0 : i32
    %c0_i32_1 = arith.constant 0 : i32
    return %c0_i32, %c0_i32_0 : i32, i32
  }
  func.func @transform_4(%arg0: i32) -> (i32, i32) {
    %c0_i32 = arith.constant 0 : i32
    %c0_i32_0 = arith.constant 0 : i32
    %c0_i32_1 = arith.constant 0 : i32
    return %c0_i32, %c0_i32_0 : i32, i32
  }
  func.func @transform_5(%arg0: i32) -> (i32, i32) {
    %c0_i32 = arith.constant 0 : i32
    %c0_i32_0 = arith.constant 0 : i32
    %c0_i32_1 = arith.constant 0 : i32
    return %c0_i32, %c0_i32_0 : i32, i32
  }
  func.func @transform_6(%arg0: i32) -> (i32, i32) {
    %c0_i32 = arith.constant 0 : i32
    %c0_i32_0 = arith.constant 0 : i32
    %c0_i32_1 = arith.constant 0 : i32
    return %c0_i32, %c0_i32_0 : i32, i32
  }
  func.func @transform_7(%arg0: i32) -> (i32, i32) {
    %c0_i32 = arith.constant 0 : i32
    %c0_i32_0 = arith.constant 0 : i32
    return %arg0, %c0_i32 : i32, i32
  }
}

</mosaic_0001>

<bundles_post_ra>
// kernel: tpu_custom_call.1
= control target key start
LH: loop header
LB: loop body
LE: loop exit
PB: predicated region body
PF: predicated region fallthrough
CT: control target
= control target key end

     0   :  { %12 = vsyncpa [#allocation3], 0  ;;  %s4548_s0 = inlined_call_operand.hbm [shape: bf16[16,784], index: 0, kind: input, shape index: {}]   ;;  %s4549_s1 = inlined_call_operand.hbm [shape: bf16[784,512], index: 1, kind: input, shape index: {}]   ;;  %s4550_s2 = inlined_call_operand.vmem [shape: f32[1,512], index: 2, kind: input, shape index: {}]   ;;  %s4551_s3 = inlined_call_operand.hbm [shape: bf16[512,512], index: 3, kind: input, shape index: {}]   ;;  %s4552_s4 = inlined_call_operand.vmem [shape: f32[1,512], index: 4, kind: input, shape index: {}]   ;;  %s4553_s5 = inlined_call_operand.hbm [shape: bf16[512,256], index: 5, kind: input, shape index: {}]   ;;  %s4554_s6 = inlined_call_operand.vmem [shape: f32[1,256], index: 6, kind: input, shape index: {}]   ;;  %s4555_s7 = inlined_call_operand.hbm [shape: f32[16,256], index: 7, kind: output, shape index: {}]  }
   0x1   :  { %13 = vsyncpa [#allocation6], 0 }
   0x2   :  { %14 = vsyncpa [#allocation9], 0 }
   0x3   :  { %15 = vsyncpa [#allocation4], 0  ;;  %s4338_s24 = smov [#allocation5]   ;;  %s4220_s28 = scalar_lea.hbm %s4549_s1, 25088 }
   0x4   :  { %s33_s25 = sshll.u32 %s4338_s24, 4  ;;  %p4221_p0 = scmp.ne.s32.totalorder %s4549_s1, %s4220_s28  ;;  %s34_s25 = int_to_ptr.vmem [resolvable:$true] %s33_s25 }
   0x5   :  { %p4224_p1 = scmp.lt.u32.totalorder %s4220_s28, %s4549_s1 }
   0x7   :  { %p4226_p2 = pnand %p4224_p1, %p4221_p0 }
   0x9   :  { %4229 = shalt.err (!%p4226_p2)
}
   0xa   :  { %s4230_s10 = scalar_lea.vmem %s34_s25, 25088  ;;  %p4235_p4 = scmp.lt.s32.totalorder %s34_s25, %s34_s25 }
   0xb   :  { %p4231_p3 = scmp.ne.s32.totalorder %s34_s25, %s4230_s10  ;;  %p4236_p5 = scmp.lt.s32.totalorder %s4230_s10, %s4230_s10 }
   0xd   :  { %p4237_p6 = por %p4236_p5, %p4235_p4 }
   0xf   :  { %p4238_p7 = pnand %p4237_p6, %p4231_p3 }
  0x11   :  { %4241 = shalt.err (!%p4238_p7)
}
  0x12   :  { %s4339_s11 = smov 256   ;;  %s4340_s12 = smov 16  }
  0x13   :  { %39 = dma.hbm_to_vmem [thread:$0]  %s4549_s1, 25088, %s34_s25, [#allocation6], %s4339_s11, %s4339_s11, %s4340_s12  }
  0x14   :  { %s4341_s15 = smov [#allocation2]   ;;  %s4242_s19 = scalar_lea.hbm %s4548_s0, 896 }
  0x15   :  { %s21_s16 = sshll.u32 %s4341_s15, 4  ;;  %p4243_p8 = scmp.ne.s32.totalorder %s4548_s0, %s4242_s19  ;;  %s22_s16 = int_to_ptr.vmem [resolvable:$true] %s21_s16 }
  0x16   :  { %p4246_p9 = scmp.lt.u32.totalorder %s4242_s19, %s4548_s0 }
  0x18   :  { %p4248_p10 = pnand %p4246_p9, %p4243_p8 }
  0x1a   :  { %4251 = shalt.err (!%p4248_p10)
}
  0x1b   :  { %s4252_s24 = scalar_lea.vmem %s22_s16, 896  ;;  %p4257_p12 = scmp.lt.s32.totalorder %s22_s16, %s22_s16 }
  0x1c   :  { %p4253_p11 = scmp.ne.s32.totalorder %s22_s16, %s4252_s24  ;;  %p4258_p13 = scmp.lt.s32.totalorder %s4252_s24, %s4252_s24 }
  0x1e   :  { %p4259_p0 = por %p4258_p13, %p4257_p12 }
  0x20   :  { %p4260_p1 = pnand %p4259_p0, %p4253_p11 }
  0x22   :  { %4263 = shalt.err (!%p4260_p1)
}
  0x23   :  { %s4342_s1 = smov 448   ;;  %s4343_s25 = smov 28  }
  0x24   :  { %27 = dma.hbm_to_vmem [thread:$0]  %s4548_s0, 896, %s22_s16, [#allocation3], %s4342_s1, %s4342_s1, %s4343_s25  }
  0x25   :  { %s4344_s28 = smov [#allocation7]   ;;  %s4345_s30 = smov [#allocation8]  }
  0x26   :  { %s47_s29 = sshll.u32 %s4344_s28, 4  ;;  %s61_s8 = sshll.u32 %s4345_s30, 4  ;;  %s48_s29 = int_to_ptr.vmem [resolvable:$true] %s47_s29  ;;  %s4417_s8 = int_to_ptr.vmem [resolvable:$true] %s61_s8 }
  0x27   :  { %s4264_s13 = scalar_lea.hbm %s4551_s3, 16384 }
  0x28   :  { %p4265_p2 = scmp.ne.s32.totalorder %s4551_s3, %s4264_s13  ;;  %p4268_p3 = scmp.lt.u32.totalorder %s4264_s13, %s4551_s3 }
  0x2a   :  { %p4270_p4 = pnand %p4268_p3, %p4265_p2 }
  0x2c   :  { %4273 = shalt.err (!%p4270_p4)
}
  0x2d   :  { %s4274_s0 = scalar_lea.vmem %s48_s29, 16384  ;;  %p4279_p6 = scmp.lt.s32.totalorder %s48_s29, %s48_s29 }
  0x2e   :  { %p4275_p5 = scmp.ne.s32.totalorder %s48_s29, %s4274_s0  ;;  %p4280_p7 = scmp.lt.s32.totalorder %s4274_s0, %s4274_s0 }
  0x30   :  { %p4281_p8 = por %p4280_p7, %p4279_p6 }
  0x32   :  { %p4282_p9 = pnand %p4281_p8, %p4275_p5 }
  0x34   :  { %4285 = shalt.err (!%p4282_p9)
}
  0x35   :  { %53 = dma.hbm_to_vmem [thread:$0]  %s4551_s3, 16384, %s48_s29, [#allocation6], %s4339_s11, %s4339_s11, %s4340_s12  }
  0x36   :  { %s4286_s22 = scalar_lea.hbm %s4553_s5, 8192 }
  0x37   :  { %p4287_p10 = scmp.ne.s32.totalorder %s4553_s5, %s4286_s22  ;;  %p4290_p11 = scmp.lt.u32.totalorder %s4286_s22, %s4553_s5 }
  0x39   :  { %p4292_p12 = pnand %p4290_p11, %p4287_p10 }
  0x3b   :  { %4295 = shalt.err (!%p4292_p12)
}
  0x3c   :  { %s4296_s26 = scalar_lea.vmem %s4417_s8, 8192  ;;  %p4301_p0 = scmp.lt.s32.totalorder %s4417_s8, %s4417_s8 }
  0x3d   :  { %p4297_p13 = scmp.ne.s32.totalorder %s4417_s8, %s4296_s26  ;;  %p4302_p1 = scmp.lt.s32.totalorder %s4296_s26, %s4296_s26 }
  0x3f   :  { %p4303_p2 = por %p4302_p1, %p4301_p0 }
  0x41   :  { %p4304_p3 = pnand %p4303_p2, %p4297_p13 }
  0x43   :  { %4307 = shalt.err (!%p4304_p3)
}
  0x44   :  { %s4346_s3 = smov 128   ;;  %s4347_s27 = smov 8  }
  0x45   :  { %67 = dma.hbm_to_vmem [thread:$0]  %s4553_s5, 8192, %s4417_s8, [#allocation9], %s4346_s3, %s4346_s3, %s4347_s27  }
  0x46   :  { %4330 = dma.done.wait [#allocation3], 896  }
  0x47   :  { %4331 = vsyncadd [#allocation3], 4294966400 }
  0x48   :  { %4332 = dma.done.wait [#allocation6], 41472  }
  0x49   :  { %4333 = vsyncadd [#allocation6], 4294925824 }
  0x4a   :  { %4334 = dma.done.wait [#allocation9], 8192  }
  0x4b   :  { %4335 = vsyncadd [#allocation9], 4294959104  ;;  %v3628_v0 = vld [vmem:[#allocation5 + $0x4] ss:$16 sps:$4 sm:$0xff]   ;;  %v3632_v2 = vld [vmem:[#allocation5] ss:$16 sps:$4 sm:$0xff]  }
  0x4c   :  { %v3630_v1 = vld [vmem:[#allocation5 + $0x204] ss:$16 sps:$4 sm:$0xff]   ;;  %1328 = vmatprep.subr.bf16.mxu1 %v3628_v0  ;;  %v3633_v3 = vld [vmem:[#allocation5 + $0x200] ss:$16 sps:$4 sm:$0xff]   ;;  %v3726_v49 = vld [vmem:[#allocation2 + $0x4] ss:$28 sps:$4 sm:$0xff]  }
  0x4d   :  { %1371 = vmatprep.subr.bf16.mxu0 %v3630_v1  ;;  %v3634_v4 = vld [vmem:[#allocation5 + $0x24] ss:$16 sps:$4 sm:$0xff]   ;;  %1329 = vmatpush1.bf16.msra.mxu1 %v3632_v2  ;;  %v3638_v6 = vld [vmem:[#allocation5 + $0x20] ss:$16 sps:$4 sm:$0xff]   ;;  %vm1324_vm0 = vcmask 130048   ;;  %s4349_s10 = smov [#allocation10]  }
  0x4e   :  { %1372 = vmatpush1.bf16.msra.mxu0 %v3633_v3  ;;  %v3636_v5 = vld [vmem:[#allocation5 + $0x224] ss:$16 sps:$4 sm:$0xff]   ;;  %1330 = vmatprep.subr.bf16.mxu1 %v3634_v4  ;;  %v3639_v7 = vld [vmem:[#allocation5 + $0x220] ss:$16 sps:$4 sm:$0xff]   ;;  %v3735_v3 = vld [vmem:[#allocation5 + $0xc] ss:$16 sps:$4 sm:$0xff]  }
  0x4f   :  { %1373 = vmatprep.subr.bf16.mxu0 %v3636_v5  ;;  %v3640_v8 = vld [vmem:[#allocation5 + $0x44] ss:$16 sps:$4 sm:$0xff]   ;;  %v3644_v10 = vld [vmem:[#allocation5 + $0x40] ss:$16 sps:$4 sm:$0xff]   ;;  %1360 = vmatprep.mubr.bf16.mxu1 %v3726_v49  ;;  %s3149_s13 = sshll.u32 %s4349_s10, 4  ;;  %s3150_s13 = int_to_ptr.vmem [resolvable:$true] %s3149_s13 }
  0x50   :  { %v3642_v9 = vld [vmem:[#allocation5 + $0x244] ss:$16 sps:$4 sm:$0xff]   ;;  %v3645_v11 = vld [vmem:[#allocation5 + $0x240] ss:$16 sps:$4 sm:$0xff]   ;;  %p4313_p5 = scmp.lt.s32.totalorder %s3150_s13, %s3150_s13 }
  0x51   :  { %1331 = vmatpush1.bf16.msra.mxu1 %v3638_v6  ;;  %v3646_v12 = vld [vmem:[#allocation5 + $0x64] ss:$16 sps:$4 sm:$0xff]   ;;  %v3650_v14 = vld [vmem:[#allocation5 + $0x60] ss:$16 sps:$4 sm:$0xff]  }
  0x52   :  { %1374 = vmatpush1.bf16.msra.mxu0 %v3639_v7  ;;  %1332 = vmatprep.subr.bf16.mxu1 %v3640_v8  ;;  %v3648_v13 = vld [vmem:[#allocation5 + $0x264] ss:$16 sps:$4 sm:$0xff]   ;;  %v3651_v15 = vld [vmem:[#allocation5 + $0x260] ss:$16 sps:$4 sm:$0xff]   ;;  %v3733_v7 = vld [vmem:[#allocation5 + $0x8] ss:$16 sps:$4 sm:$0xff]  }
  0x53   :  { %1375 = vmatprep.subr.bf16.mxu0 %v3642_v9  ;;  %v3652_v16 = vld [vmem:[#allocation5 + $0x84] ss:$16 sps:$4 sm:$0xff]   ;;  %v3656_v18 = vld [vmem:[#allocation5 + $0x80] ss:$16 sps:$4 sm:$0xff]   ;;  %v3741_v9 = vld [vmem:[#allocation5 + $0x2c] ss:$16 sps:$4 sm:$0xff]  }
  0x54   :  { %v3654_v17 = vld [vmem:[#allocation5 + $0x284] ss:$16 sps:$4 sm:$0xff]   ;;  %v3657_v19 = vld [vmem:[#allocation5 + $0x280] ss:$16 sps:$4 sm:$0xff]  }
  0x55   :  { %1333 = vmatpush1.bf16.msra.mxu1 %v3644_v10  ;;  %v3658_v20 = vld [vmem:[#allocation5 + $0xa4] ss:$16 sps:$4 sm:$0xff]   ;;  %v3662_v22 = vld [vmem:[#allocation5 + $0xa0] ss:$16 sps:$4 sm:$0xff]  }
  0x56   :  { %1376 = vmatpush1.bf16.msra.mxu0 %v3645_v11  ;;  %1334 = vmatprep.subr.bf16.mxu1 %v3646_v12  ;;  %v3660_v21 = vld [vmem:[#allocation5 + $0x2a4] ss:$16 sps:$4 sm:$0xff]   ;;  %v3663_v23 = vld [vmem:[#allocation5 + $0x2a0] ss:$16 sps:$4 sm:$0xff]   ;;  %v3739_v11 = vld [vmem:[#allocation5 + $0x28] ss:$16 sps:$4 sm:$0xff]  }
  0x57   :  { %1377 = vmatprep.subr.bf16.mxu0 %v3648_v13  ;;  %v3664_v24 = vld [vmem:[#allocation5 + $0xc4] ss:$16 sps:$4 sm:$0xff]   ;;  %v3668_v26 = vld [vmem:[#allocation5 + $0xc0] ss:$16 sps:$4 sm:$0xff]   ;;  %v3747_v13 = vld [vmem:[#allocation5 + $0x4c] ss:$16 sps:$4 sm:$0xff]  }
  0x58   :  { %v3666_v25 = vld [vmem:[#allocation5 + $0x2c4] ss:$16 sps:$4 sm:$0xff]   ;;  %v3669_v27 = vld [vmem:[#allocation5 + $0x2c0] ss:$16 sps:$4 sm:$0xff]  }
  0x59   :  { %1335 = vmatpush1.bf16.msra.mxu1 %v3650_v14  ;;  %v3670_v28 = vld [vmem:[#allocation5 + $0xe4] ss:$16 sps:$4 sm:$0xff]   ;;  %v3674_v30 = vld [vmem:[#allocation5 + $0xe0] ss:$16 sps:$4 sm:$0xff]  }
  0x5a   :  { %1378 = vmatpush1.bf16.msra.mxu0 %v3651_v15  ;;  %1336 = vmatprep.subr.bf16.mxu1 %v3652_v16  ;;  %v3672_v29 = vld [vmem:[#allocation5 + $0x2e4] ss:$16 sps:$4 sm:$0xff]   ;;  %v3675_v31 = vld [vmem:[#allocation5 + $0x2e0] ss:$16 sps:$4 sm:$0xff]   ;;  %v3745_v15 = vld [vmem:[#allocation5 + $0x48] ss:$16 sps:$4 sm:$0xff]  }
  0x5b   :  { %1379 = vmatprep.subr.bf16.mxu0 %v3654_v17  ;;  %v3676_v32 = vld [vmem:[#allocation5 + $0x104] ss:$16 sps:$4 sm:$0xff]   ;;  %v3680_v34 = vld [vmem:[#allocation5 + $0x100] ss:$16 sps:$4 sm:$0xff]   ;;  %v3753_v17 = vld [vmem:[#allocation5 + $0x6c] ss:$16 sps:$4 sm:$0xff]  }
  0x5c   :  { %v3678_v33 = vld [vmem:[#allocation5 + $0x304] ss:$16 sps:$4 sm:$0xff]   ;;  %v3681_v35 = vld [vmem:[#allocation5 + $0x300] ss:$16 sps:$4 sm:$0xff]  }
  0x5d   :  { %1337 = vmatpush1.bf16.msra.mxu1 %v3656_v18  ;;  %v3682_v36 = vld [vmem:[#allocation5 + $0x124] ss:$16 sps:$4 sm:$0xff]   ;;  %v3686_v38 = vld [vmem:[#allocation5 + $0x120] ss:$16 sps:$4 sm:$0xff]  }
  0x5e   :  { %1380 = vmatpush1.bf16.msra.mxu0 %v3657_v19  ;;  %1338 = vmatprep.subr.bf16.mxu1 %v3658_v20  ;;  %v3684_v37 = vld [vmem:[#allocation5 + $0x324] ss:$16 sps:$4 sm:$0xff]   ;;  %v3687_v39 = vld [vmem:[#allocation5 + $0x320] ss:$16 sps:$4 sm:$0xff]   ;;  %v3751_v19 = vld [vmem:[#allocation5 + $0x68] ss:$16 sps:$4 sm:$0xff]  }
  0x5f   :  { %1381 = vmatprep.subr.bf16.mxu0 %v3660_v21  ;;  %v3688_v40 = vld [vmem:[#allocation5 + $0x144] ss:$16 sps:$4 sm:$0xff]   ;;  %v3692_v42 = vld [vmem:[#allocation5 + $0x140] ss:$16 sps:$4 sm:$0xff]   ;;  %v3759_v21 = vld [vmem:[#allocation5 + $0x8c] ss:$16 sps:$4 sm:$0xff]  }
  0x60   :  { %v3690_v41 = vld [vmem:[#allocation5 + $0x344] ss:$16 sps:$4 sm:$0xff]   ;;  %v3693_v43 = vld [vmem:[#allocation5 + $0x340] ss:$16 sps:$4 sm:$0xff]  }
  0x61   :  { %1339 = vmatpush1.bf16.msra.mxu1 %v3662_v22  ;;  %v3694_v44 = vld [vmem:[#allocation5 + $0x164] ss:$16 sps:$4 sm:$0xff]   ;;  %v3698_v46 = vld [vmem:[#allocation5 + $0x160] ss:$16 sps:$4 sm:$0xff]  }
  0x62   :  { %1382 = vmatpush1.bf16.msra.mxu0 %v3663_v23  ;;  %1340 = vmatprep.subr.bf16.mxu1 %v3664_v24  ;;  %v3696_v45 = vld [vmem:[#allocation5 + $0x364] ss:$16 sps:$4 sm:$0xff]   ;;  %v3699_v47 = vld [vmem:[#allocation5 + $0x360] ss:$16 sps:$4 sm:$0xff]   ;;  %v3757_v23 = vld [vmem:[#allocation5 + $0x88] ss:$16 sps:$4 sm:$0xff]  }
  0x63   :  { %1383 = vmatprep.subr.bf16.mxu0 %v3666_v25  ;;  %v3700_v48 = vld [vmem:[#allocation5 + $0x184] ss:$16 sps:$4 sm:$0xff]   ;;  %v3704_v52 = vld [vmem:[#allocation5 + $0x180] ss:$16 sps:$4 sm:$0xff]   ;;  %v3765_v25 = vld [vmem:[#allocation5 + $0xac] ss:$16 sps:$4 sm:$0xff]  }
  0x64   :  { %v3702_v50 = vld [vmem:[#allocation5 + $0x384] ss:$16 sps:$4 sm:$0xff]   ;;  %v3705_v53 = vld [vmem:[#allocation5 + $0x380] ss:$16 sps:$4 sm:$0xff]  }
  0x65   :  { %1341 = vmatpush1.bf16.msra.mxu1 %v3668_v26  ;;  %v4451_v51 = vld [vmem:[#allocation2 + $0xc] ss:$28 sps:$4 sm:$0xff]   ;;  %v4454_v4 = vld [vmem:[#allocation2] ss:$28 sps:$4 sm:$0xff]  }
  0x66   :  { %1384 = vmatpush1.bf16.msra.mxu0 %v3669_v27  ;;  %1342 = vmatprep.subr.bf16.mxu1 %v3670_v28  ;;  %v3706_v54 = vld [vmem:[#allocation5 + $0x1a4] ss:$16 sps:$4 sm:$0xff]   ;;  %v3710_v56 = vld [vmem:[#allocation5 + $0x1a0] ss:$16 sps:$4 sm:$0xff]   ;;  %v3763_v27 = vld [vmem:[#allocation5 + $0xa8] ss:$16 sps:$4 sm:$0xff]  }
  0x67   :  { %1385 = vmatprep.subr.bf16.mxu0 %v3672_v29  ;;  %1403 = vmatprep.mubr.bf16.mxu0 %v4451_v51  ;;  %v3708_v55 = vld [vmem:[#allocation5 + $0x3a4] ss:$16 sps:$4 sm:$0xff]   ;;  %v3711_v57 = vld [vmem:[#allocation5 + $0x3a0] ss:$16 sps:$4 sm:$0xff]   ;;  %v3771_v29 = vld [vmem:[#allocation5 + $0xcc] ss:$16 sps:$4 sm:$0xff]  }
  0x68   :  { %v3712_v58 = vld [vmem:[#allocation5 + $0x1c4] ss:$16 sps:$4 sm:$0xff]   ;;  %v3716_v60 = vld [vmem:[#allocation5 + $0x1c0] ss:$16 sps:$4 sm:$0xff]  }
  0x69   :  { %1343 = vmatpush1.bf16.msra.mxu1 %v3674_v30  ;;  %v3714_v59 = vld [vmem:[#allocation5 + $0x3c4] ss:$16 sps:$4 sm:$0xff]   ;;  %v3717_v61 = vld [vmem:[#allocation5 + $0x3c0] ss:$16 sps:$4 sm:$0xff]  }
  0x6a   :  { %1386 = vmatpush1.bf16.msra.mxu0 %v3675_v31  ;;  %1344 = vmatprep.subr.bf16.mxu1 %v3676_v32  ;;  %v3718_v62 = vld [vmem:[#allocation5 + $0x1e4] ss:$16 sps:$4 sm:$0xff]   ;;  %v3722_v0 = vld [vmem:[#allocation5 + $0x1e0] ss:$16 sps:$4 sm:$0xff]   ;;  %v3769_v31 = vld [vmem:[#allocation5 + $0xc8] ss:$16 sps:$4 sm:$0xff]  }
  0x6b   :  { %1387 = vmatprep.subr.bf16.mxu0 %v3678_v33  ;;  %v3720_v63 = vld [vmem:[#allocation5 + $0x3e4] ss:$16 sps:$4 sm:$0xff]   ;;  %v3723_v1 = vld [vmem:[#allocation5 + $0x3e0] ss:$16 sps:$4 sm:$0xff]   ;;  %v3777_v33 = vld [vmem:[#allocation5 + $0xec] ss:$16 sps:$4 sm:$0xff]  }
  0x6c   :  { %v3732_v2 = vld [vmem:[#allocation5 + $0x404] ss:$16 sps:$4 sm:$0xff]   ;;  %v4456_v5 = vld [vmem:[#allocation2 + $0x8] ss:$28 sps:$4 sm:$0xff]  }
  0x6d   :  { %1345 = vmatpush1.bf16.msra.mxu1 %v3680_v34  ;;  %v3730_v6 = vld [vmem:[#allocation5 + $0x400] ss:$16 sps:$4 sm:$0xff]   ;;  %v3738_v8 = vld [vmem:[#allocation5 + $0x424] ss:$16 sps:$4 sm:$0xff]   ;;  %v4460_v34 = vld [vmem:[#allocation2 + $0x14] ss:$28 sps:$4 sm:$0xff]  }
  0x6e   :  { %1388 = vmatpush1.bf16.msra.mxu0 %v3681_v35  ;;  %1346 = vmatprep.subr.bf16.mxu1 %v3682_v36  ;;  %v3736_v10 = vld [vmem:[#allocation5 + $0x420] ss:$16 sps:$4 sm:$0xff]   ;;  %v3744_v12 = vld [vmem:[#allocation5 + $0x444] ss:$16 sps:$4 sm:$0xff]   ;;  %v3775_v36 = vld [vmem:[#allocation5 + $0xe8] ss:$16 sps:$4 sm:$0xff]  }
  0x6f   :  { %1389 = vmatprep.subr.bf16.mxu0 %v3684_v37  ;;  %v3742_v14 = vld [vmem:[#allocation5 + $0x440] ss:$16 sps:$4 sm:$0xff]   ;;  %v3750_v16 = vld [vmem:[#allocation5 + $0x464] ss:$16 sps:$4 sm:$0xff]  }
  0x70   :  { %v3748_v18 = vld [vmem:[#allocation5 + $0x460] ss:$16 sps:$4 sm:$0xff]   ;;  %v3756_v20 = vld [vmem:[#allocation5 + $0x484] ss:$16 sps:$4 sm:$0xff]  }
  0x71   :  { %1347 = vmatpush1.bf16.msra.mxu1 %v3686_v38  ;;  %v3754_v22 = vld [vmem:[#allocation5 + $0x480] ss:$16 sps:$4 sm:$0xff]   ;;  %v3762_v24 = vld [vmem:[#allocation5 + $0x4a4] ss:$16 sps:$4 sm:$0xff]   ;;  %v3783_v38 = vld [vmem:[#allocation5 + $0x10c] ss:$16 sps:$4 sm:$0xff]  }
  0x72   :  { %1390 = vmatpush1.bf16.msra.mxu0 %v3687_v39  ;;  %1348 = vmatprep.subr.bf16.mxu1 %v3688_v40  ;;  %v3760_v26 = vld [vmem:[#allocation5 + $0x4a0] ss:$16 sps:$4 sm:$0xff]   ;;  %v3768_v28 = vld [vmem:[#allocation5 + $0x4c4] ss:$16 sps:$4 sm:$0xff]   ;;  %v3781_v40 = vld [vmem:[#allocation5 + $0x108] ss:$16 sps:$4 sm:$0xff]  }
  0x73   :  { %1391 = vmatprep.subr.bf16.mxu0 %v3690_v41  ;;  %v3766_v30 = vld [vmem:[#allocation5 + $0x4c0] ss:$16 sps:$4 sm:$0xff]   ;;  %v3774_v32 = vld [vmem:[#allocation5 + $0x4e4] ss:$16 sps:$4 sm:$0xff]  }
  0x74   :  { %v3772_v35 = vld [vmem:[#allocation5 + $0x4e0] ss:$16 sps:$4 sm:$0xff]   ;;  %v3780_v37 = vld [vmem:[#allocation5 + $0x504] ss:$16 sps:$4 sm:$0xff]  }
  0x75   :  { %1349 = vmatpush1.bf16.msra.mxu1 %v3692_v42  ;;  %v3778_v39 = vld [vmem:[#allocation5 + $0x500] ss:$16 sps:$4 sm:$0xff]   ;;  %v3786_v41 = vld [vmem:[#allocation5 + $0x524] ss:$16 sps:$4 sm:$0xff]   ;;  %v3789_v42 = vld [vmem:[#allocation5 + $0x12c] ss:$16 sps:$4 sm:$0xff]  }
  0x76   :  { %1392 = vmatpush1.bf16.msra.mxu0 %v3693_v43  ;;  %1350 = vmatprep.subr.bf16.mxu1 %v3694_v44  ;;  %v3784_v43 = vld [vmem:[#allocation5 + $0x520] ss:$16 sps:$4 sm:$0xff]   ;;  %v3787_v44 = vld [vmem:[#allocation5 + $0x128] ss:$16 sps:$4 sm:$0xff]  }
  0x77   :  { %1393 = vmatprep.subr.bf16.mxu0 %v3696_v45  ;;  %v3792_v45 = vld [vmem:[#allocation5 + $0x544] ss:$16 sps:$4 sm:$0xff]  }
  0x79   :  { %1351 = vmatpush1.bf16.msra.mxu1 %v3698_v46  ;;  %v3795_v46 = vld [vmem:[#allocation5 + $0x14c] ss:$16 sps:$4 sm:$0xff]  }
  0x7a   :  { %1394 = vmatpush1.bf16.msra.mxu0 %v3699_v47  ;;  %1352 = vmatprep.subr.bf16.mxu1 %v3700_v48  ;;  %v3790_v47 = vld [vmem:[#allocation5 + $0x540] ss:$16 sps:$4 sm:$0xff]   ;;  %v3793_v48 = vld [vmem:[#allocation5 + $0x148] ss:$16 sps:$4 sm:$0xff]  }
  0x7b   :  { %1395 = vmatprep.subr.bf16.mxu0 %v3702_v50  ;;  %v3801_v50 = vld [vmem:[#allocation5 + $0x16c] ss:$16 sps:$4 sm:$0xff]  }
  0x7d   :  { %1353 = vmatpush1.bf16.msra.mxu1 %v3704_v52  ;;  %v3796_v52 = vld [vmem:[#allocation5 + $0x560] ss:$16 sps:$4 sm:$0xff]  }
  0x7e   :  { %1396 = vmatpush1.bf16.msra.mxu0 %v3705_v53  ;;  %1354 = vmatprep.subr.bf16.mxu1 %v3706_v54  ;;  %v3799_v53 = vld [vmem:[#allocation5 + $0x168] ss:$16 sps:$4 sm:$0xff]   ;;  %v3804_v54 = vld [vmem:[#allocation5 + $0x584] ss:$16 sps:$4 sm:$0xff]  }
  0x7f   :  { %1397 = vmatprep.subr.bf16.mxu0 %v3708_v55  ;;  %v3807_v55 = vld [vmem:[#allocation5 + $0x18c] ss:$16 sps:$4 sm:$0xff]  }
  0x81   :  { %1355 = vmatpush1.bf16.msra.mxu1 %v3710_v56  ;;  %v3802_v56 = vld [vmem:[#allocation5 + $0x580] ss:$16 sps:$4 sm:$0xff]  }
  0x82   :  { %1398 = vmatpush1.bf16.msra.mxu0 %v3711_v57  ;;  %1356 = vmatprep.subr.bf16.mxu1 %v3712_v58  ;;  %v3805_v57 = vld [vmem:[#allocation5 + $0x188] ss:$16 sps:$4 sm:$0xff]   ;;  %v3810_v58 = vld [vmem:[#allocation5 + $0x5a4] ss:$16 sps:$4 sm:$0xff]  }
  0x83   :  { %1399 = vmatprep.subr.bf16.mxu0 %v3714_v59  ;;  %v3813_v59 = vld [vmem:[#allocation5 + $0x1ac] ss:$16 sps:$4 sm:$0xff]  }
  0x85   :  { %1357 = vmatpush1.bf16.msra.mxu1 %v3716_v60  ;;  %v3808_v60 = vld [vmem:[#allocation5 + $0x5a0] ss:$16 sps:$4 sm:$0xff]  }
  0x86   :  { %1400 = vmatpush1.bf16.msra.mxu0 %v3717_v61  ;;  %1358 = vmatprep.subr.bf16.mxu1 %v3718_v62  ;;  %v3811_v61 = vld [vmem:[#allocation5 + $0x1a8] ss:$16 sps:$4 sm:$0xff]   ;;  %v3816_v62 = vld [vmem:[#allocation5 + $0x5c4] ss:$16 sps:$4 sm:$0xff]  }
  0x87   :  { %1401 = vmatprep.subr.bf16.mxu0 %v3720_v63  ;;  %v3819_v63 = vld [vmem:[#allocation5 + $0x1cc] ss:$16 sps:$4 sm:$0xff]  }
  0x89   :  { %1359 = vmatpush1.bf16.msra.mxu1 %v3722_v0  ;;  %v3814_v0 = vld [vmem:[#allocation5 + $0x5c0] ss:$16 sps:$4 sm:$0xff]  }
  0x8a   :  { %1402 = vmatpush1.bf16.msra.mxu0 %v3723_v1  ;;  %1500 = vmatprep.subr.bf16.mxu1 %v3735_v3  ;;  %v3817_v1 = vld [vmem:[#allocation5 + $0x1c8] ss:$16 sps:$4 sm:$0xff]   ;;  %v3825_v3 = vld [vmem:[#allocation5 + $0x1ec] ss:$16 sps:$4 sm:$0xff]  }
  0x8b   :  { %1414 = vmatprep.subr.bf16.mxu0 %v3732_v2  ;;  %v3822_v2 = vld [vmem:[#allocation5 + $0x5e4] ss:$16 sps:$4 sm:$0xff]  }
  0x8c   :  { %1361 = vmatmul.mubr.bf16.vlgmr.msra.gmra.mrb[0].mxu1 %v4454_v4 }
  0x8d   :  { %1404 = vmatmul.mubr.bf16.vlgmr.msra.gmra.mrb[0].mxu0 %v4456_v5  ;;  %1501 = vmatpush1.bf16.msra.mxu1 %v3733_v7  ;;  %v3823_v7 = vld [vmem:[#allocation5 + $0x1e8] ss:$16 sps:$4 sm:$0xff]  }
  0x8e   :  { %1415 = vmatpush1.bf16.msra.mxu0 %v3730_v6  ;;  %1502 = vmatprep.subr.bf16.mxu1 %v3741_v9  ;;  %v3820_v6 = vld [vmem:[#allocation5 + $0x5e0] ss:$16 sps:$4 sm:$0xff]   ;;  %v3837_v9 = vld [vmem:[#allocation5 + $0x604] ss:$16 sps:$4 sm:$0xff]  }
  0x8f   :  { %1416 = vmatprep.subr.bf16.mxu0 %v3738_v8  ;;  %1532 = vmatprep.mubr.bf16.mxu1 %v3726_v49  ;;  %v3798_v49 = vld [vmem:[#allocation5 + $0x564] ss:$16 sps:$4 sm:$0xff]   ;;  %v3831_v8 = vld [vmem:[#allocation5 + $0x20c] ss:$16 sps:$4 sm:$0xff]  }
  0x90   :  { %1446 = vmatprep.mubr.bf16.mxu0 %v4460_v34 }
  0x91   :  { %1503 = vmatpush1.bf16.msra.mxu1 %v3739_v11  ;;  %v3829_v11 = vld [vmem:[#allocation5 + $0x208] ss:$16 sps:$4 sm:$0xff]  }
  0x92   :  { %1417 = vmatpush1.bf16.msra.mxu0 %v3736_v10  ;;  %1504 = vmatprep.subr.bf16.mxu1 %v3747_v13  ;;  %v4463_v10 = vld [vmem:[#allocation2 + $0x10] ss:$28 sps:$4 sm:$0xff]   ;;  %v3834_v13 = vld [vmem:[#allocation5 + $0x22c] ss:$16 sps:$4 sm:$0xff]  }
  0x93   :  { %1418 = vmatprep.subr.bf16.mxu0 %v3744_v12  ;;  %v3835_v12 = vld [vmem:[#allocation5 + $0x600] ss:$16 sps:$4 sm:$0xff]  }
  0x95   :  { %1505 = vmatpush1.bf16.msra.mxu1 %v3745_v15  ;;  %v3840_v15 = vld [vmem:[#allocation5 + $0x24c] ss:$16 sps:$4 sm:$0xff]  }
  0x96   :  { %1419 = vmatpush1.bf16.msra.mxu0 %v3742_v14  ;;  %1506 = vmatprep.subr.bf16.mxu1 %v3753_v17  ;;  %v3832_v14 = vld [vmem:[#allocation5 + $0x228] ss:$16 sps:$4 sm:$0xff]  }
  0x97   :  { %1420 = vmatprep.subr.bf16.mxu0 %v3750_v16  ;;  %v4348_v16 = vmov 0   ;;  %v3838_v17 = vld [vmem:[#allocation5 + $0x248] ss:$16 sps:$4 sm:$0xff]  }
  0x99   :  { %1507 = vmatpush1.bf16.msra.mxu1 %v3751_v19  ;;  %v4469_v19 = vld [vmem:[#allocation2 + $0x18] ss:$28 sps:$4 sm:$0xff]  }
  0x9a   :  { %1421 = vmatpush1.bf16.msra.mxu0 %v3748_v18  ;;  %1508 = vmatprep.subr.bf16.mxu1 %v3759_v21  ;;  %v3844_v18 = vld [vmem:[#allocation5 + $0x26c] ss:$16 sps:$4 sm:$0xff]  }
  0x9b   :  { %1422 = vmatprep.subr.bf16.mxu0 %v3756_v20  ;;  %v3842_v20 = vld [vmem:[#allocation5 + $0x268] ss:$16 sps:$4 sm:$0xff]   ;;  %v3847_v21 = vld [vmem:[#allocation5 + $0x28c] ss:$16 sps:$4 sm:$0xff]  }
  0x9d   :  { %1509 = vmatpush1.bf16.msra.mxu1 %v3757_v23  ;;  %v3848_v23 = vld [vmem:[#allocation5 + $0x2a8] ss:$16 sps:$4 sm:$0xff]  }
  0x9e   :  { %1423 = vmatpush1.bf16.msra.mxu0 %v3754_v22  ;;  %1510 = vmatprep.subr.bf16.mxu1 %v3765_v25  ;;  %v3850_v22 = vld [vmem:[#allocation5 + $0x2ac] ss:$16 sps:$4 sm:$0xff]  }
  0x9f   :  { %1424 = vmatprep.subr.bf16.mxu0 %v3762_v24  ;;  %v3851_v24 = vld [vmem:[#allocation5 + $0x2c8] ss:$16 sps:$4 sm:$0xff]   ;;  %v3856_v25 = vld [vmem:[#allocation5 + $0x2ec] ss:$16 sps:$4 sm:$0xff]  }
  0xa1   :  { %1511 = vmatpush1.bf16.msra.mxu1 %v3763_v27  ;;  %v3934_v27 = vld [vmem:[#allocation7 + $0x4] ss:$16 sps:$4 sm:$0xff]  }
  0xa2   :  { %1425 = vmatpush1.bf16.msra.mxu0 %v3760_v26  ;;  %1512 = vmatprep.subr.bf16.mxu1 %v3771_v29  ;;  %v3932_v26 = vld [vmem:[#allocation7] ss:$16 sps:$4 sm:$0xff]   ;;  %v3854_v29 = vld [vmem:[#allocation5 + $0x2e8] ss:$16 sps:$4 sm:$0xff]  }
  0xa3   :  { %1426 = vmatprep.subr.bf16.mxu0 %v3768_v28  ;;  %v3940_v28 = vld [vmem:[#allocation7 + $0x24] ss:$16 sps:$4 sm:$0xff]  }
  0xa5   :  { %1513 = vmatpush1.bf16.msra.mxu1 %v3769_v31  ;;  %v3938_v31 = vld [vmem:[#allocation7 + $0x20] ss:$16 sps:$4 sm:$0xff]  }
  0xa6   :  { %1427 = vmatpush1.bf16.msra.mxu0 %v3766_v30  ;;  %1514 = vmatprep.subr.bf16.mxu1 %v3777_v33  ;;  %v3859_v30 = vld [vmem:[#allocation5 + $0x30c] ss:$16 sps:$4 sm:$0xff]   ;;  %v3857_v33 = vld [vmem:[#allocation5 + $0x308] ss:$16 sps:$4 sm:$0xff]  }
  0xa7   :  { %1428 = vmatprep.subr.bf16.mxu0 %v3774_v32  ;;  %v3946_v32 = vld [vmem:[#allocation7 + $0x44] ss:$16 sps:$4 sm:$0xff]  }
  0xa9   :  { %1515 = vmatpush1.bf16.msra.mxu1 %v3775_v36  ;;  %v3944_v36 = vld [vmem:[#allocation7 + $0x40] ss:$16 sps:$4 sm:$0xff]  }
  0xaa   :  { %1429 = vmatpush1.bf16.msra.mxu0 %v3772_v35  ;;  %1516 = vmatprep.subr.bf16.mxu1 %v3783_v38  ;;  %v3862_v35 = vld [vmem:[#allocation5 + $0x32c] ss:$16 sps:$4 sm:$0xff]   ;;  %v3860_v38 = vld [vmem:[#allocation5 + $0x328] ss:$16 sps:$4 sm:$0xff]  }
  0xab   :  { %1430 = vmatprep.subr.bf16.mxu0 %v3780_v37  ;;  %v3952_v37 = vld [vmem:[#allocation7 + $0x64] ss:$16 sps:$4 sm:$0xff]  }
  0xad   :  { %1517 = vmatpush1.bf16.msra.mxu1 %v3781_v40  ;;  %v3950_v40 = vld [vmem:[#allocation7 + $0x60] ss:$16 sps:$4 sm:$0xff]  }
  0xae   :  { %1431 = vmatpush1.bf16.msra.mxu0 %v3778_v39  ;;  %1518 = vmatprep.subr.bf16.mxu1 %v3789_v42  ;;  %v3865_v39 = vld [vmem:[#allocation5 + $0x34c] ss:$16 sps:$4 sm:$0xff]   ;;  %v3863_v42 = vld [vmem:[#allocation5 + $0x348] ss:$16 sps:$4 sm:$0xff]  }
  0xaf   :  { %1432 = vmatprep.subr.bf16.mxu0 %v3786_v41  ;;  %v3958_v41 = vld [vmem:[#allocation7 + $0x84] ss:$16 sps:$4 sm:$0xff]  }
  0xb1   :  { %1519 = vmatpush1.bf16.msra.mxu1 %v3787_v44  ;;  %v3956_v44 = vld [vmem:[#allocation7 + $0x80] ss:$16 sps:$4 sm:$0xff]  }
  0xb2   :  { %1433 = vmatpush1.bf16.msra.mxu0 %v3784_v43  ;;  %1520 = vmatprep.subr.bf16.mxu1 %v3795_v46  ;;  %v3868_v43 = vld [vmem:[#allocation5 + $0x36c] ss:$16 sps:$4 sm:$0xff]   ;;  %v3866_v46 = vld [vmem:[#allocation5 + $0x368] ss:$16 sps:$4 sm:$0xff]  }
  0xb3   :  { %1434 = vmatprep.subr.bf16.mxu0 %v3792_v45  ;;  %v3964_v45 = vld [vmem:[#allocation7 + $0xa4] ss:$16 sps:$4 sm:$0xff]  }
  0xb5   :  { %1521 = vmatpush1.bf16.msra.mxu1 %v3793_v48  ;;  %v3962_v48 = vld [vmem:[#allocation7 + $0xa0] ss:$16 sps:$4 sm:$0xff]  }
  0xb6   :  { %1435 = vmatpush1.bf16.msra.mxu0 %v3790_v47  ;;  %1522 = vmatprep.subr.bf16.mxu1 %v3801_v50  ;;  %v3871_v47 = vld [vmem:[#allocation5 + $0x38c] ss:$16 sps:$4 sm:$0xff]   ;;  %v3869_v50 = vld [vmem:[#allocation5 + $0x388] ss:$16 sps:$4 sm:$0xff]  }
  0xb7   :  { %1436 = vmatprep.subr.bf16.mxu0 %v3798_v49  ;;  %v3970_v49 = vld [vmem:[#allocation7 + $0xc4] ss:$16 sps:$4 sm:$0xff]  }
  0xb9   :  { %1523 = vmatpush1.bf16.msra.mxu1 %v3799_v53  ;;  %v3968_v53 = vld [vmem:[#allocation7 + $0xc0] ss:$16 sps:$4 sm:$0xff]  }
  0xba   :  { %1437 = vmatpush1.bf16.msra.mxu0 %v3796_v52  ;;  %1524 = vmatprep.subr.bf16.mxu1 %v3807_v55  ;;  %v3874_v52 = vld [vmem:[#allocation5 + $0x3ac] ss:$16 sps:$4 sm:$0xff]   ;;  %v3872_v55 = vld [vmem:[#allocation5 + $0x3a8] ss:$16 sps:$4 sm:$0xff]  }
  0xbb   :  { %1438 = vmatprep.subr.bf16.mxu0 %v3804_v54  ;;  %v3976_v54 = vld [vmem:[#allocation7 + $0xe4] ss:$16 sps:$4 sm:$0xff]  }
  0xbd   :  { %1525 = vmatpush1.bf16.msra.mxu1 %v3805_v57  ;;  %v3974_v57 = vld [vmem:[#allocation7 + $0xe0] ss:$16 sps:$4 sm:$0xff]  }
  0xbe   :  { %1439 = vmatpush1.bf16.msra.mxu0 %v3802_v56  ;;  %1526 = vmatprep.subr.bf16.mxu1 %v3813_v59  ;;  %v3877_v56 = vld [vmem:[#allocation5 + $0x3cc] ss:$16 sps:$4 sm:$0xff]   ;;  %v3875_v59 = vld [vmem:[#allocation5 + $0x3c8] ss:$16 sps:$4 sm:$0xff]  }
  0xbf   :  { %1440 = vmatprep.subr.bf16.mxu0 %v3810_v58  ;;  %v3982_v58 = vld [vmem:[#allocation7 + $0x104] ss:$16 sps:$4 sm:$0xff]  }
  0xc1   :  { %1527 = vmatpush1.bf16.msra.mxu1 %v3811_v61  ;;  %v3980_v61 = vld [vmem:[#allocation7 + $0x100] ss:$16 sps:$4 sm:$0xff]  }
  0xc2   :  { %1441 = vmatpush1.bf16.msra.mxu0 %v3808_v60  ;;  %1528 = vmatprep.subr.bf16.mxu1 %v3819_v63  ;;  %v3880_v60 = vld [vmem:[#allocation5 + $0x3ec] ss:$16 sps:$4 sm:$0xff]   ;;  %v3878_v63 = vld [vmem:[#allocation5 + $0x3e8] ss:$16 sps:$4 sm:$0xff]  }
  0xc3   :  { %1442 = vmatprep.subr.bf16.mxu0 %v3816_v62  ;;  %v3988_v62 = vld [vmem:[#allocation7 + $0x124] ss:$16 sps:$4 sm:$0xff]  }
  0xc5   :  { %1529 = vmatpush1.bf16.msra.mxu1 %v3817_v1  ;;  %v3986_v1 = vld [vmem:[#allocation7 + $0x120] ss:$16 sps:$4 sm:$0xff]  }
  0xc6   :  { %1443 = vmatpush1.bf16.msra.mxu0 %v3814_v0  ;;  %1530 = vmatprep.subr.bf16.mxu1 %v3825_v3  ;;  %v3883_v0 = vld [vmem:[#allocation5 + $0x40c] ss:$16 sps:$4 sm:$0xff]   ;;  %v3881_v3 = vld [vmem:[#allocation5 + $0x408] ss:$16 sps:$4 sm:$0xff]  }
  0xc7   :  { %1444 = vmatprep.subr.bf16.mxu0 %v3822_v2  ;;  %v3994_v2 = vld [vmem:[#allocation7 + $0x144] ss:$16 sps:$4 sm:$0xff]  }
  0xc9   :  { %1531 = vmatpush1.bf16.msra.mxu1 %v3823_v7  ;;  %v3992_v7 = vld [vmem:[#allocation7 + $0x140] ss:$16 sps:$4 sm:$0xff]  }
  0xca   :  { %1445 = vmatpush1.bf16.msra.mxu0 %v3820_v6  ;;  %1543 = vmatprep.subr.bf16.mxu1 %v3831_v8  ;;  %v3886_v6 = vld [vmem:[#allocation5 + $0x42c] ss:$16 sps:$4 sm:$0xff]   ;;  %v4000_v8 = vld [vmem:[#allocation7 + $0x164] ss:$16 sps:$4 sm:$0xff]  }
  0xcb   :  { %1457 = vmatprep.subr.bf16.mxu0 %v3837_v9  ;;  %v3884_v9 = vld [vmem:[#allocation5 + $0x428] ss:$16 sps:$4 sm:$0xff]  }
  0xcc   :  { %1533 = vmatmul.mubr.bf16.vlgmr.msra.gmra.mrb[4].mxu1 %v4454_v4  ;;  %v3845_v4 = vld [vmem:[#allocation5 + $0x288] ss:$16 sps:$4 sm:$0xff]  }
  0xcd   :  { %1447 = vmatmul.mubr.bf16.vlgmr.msra.gmra.mrb[0].mxu0 %v4463_v10  ;;  %1544 = vmatpush1.bf16.msra.mxu1 %v3829_v11  ;;  %v3889_v11 = vld [vmem:[#allocation5 + $0x44c] ss:$16 sps:$4 sm:$0xff]  }
  0xce   :  { %1458 = vmatpush1.bf16.msra.mxu0 %v3835_v12  ;;  %1545 = vmatprep.subr.bf16.mxu1 %v3834_v13  ;;  %v3998_v12 = vld [vmem:[#allocation7 + $0x160] ss:$16 sps:$4 sm:$0xff]   ;;  %v4006_v13 = vld [vmem:[#allocation7 + $0x184] ss:$16 sps:$4 sm:$0xff]  }
  0xcf   :  { %1489 = vmatprep.mubr.bf16.mxu0 %v4348_v16  ;;  %1575 = vmatprep.mubr.bf16.mxu1 %v4451_v51  ;;  %v3853_v51 = vld [vmem:[#allocation5 + $0x2cc] ss:$16 sps:$4 sm:$0xff]  }
  0xd0   :  { %2474 = vmatprep.subr.bf16.mxu0 %v3934_v27  ;;  %v3905_v27 = vld [vmem:[#allocation5 + $0x508] ss:$16 sps:$4 sm:$0xff]  }
  0xd1   :  { %1546 = vmatpush1.bf16.msra.mxu1 %v3832_v14  ;;  %v3887_v14 = vld [vmem:[#allocation5 + $0x448] ss:$16 sps:$4 sm:$0xff]  }
  0xd2   :  { %1547 = vmatprep.subr.bf16.mxu1 %v3840_v15  ;;  %v3892_v15 = vld [vmem:[#allocation5 + $0x46c] ss:$16 sps:$4 sm:$0xff]  }
  0xd5   :  { %1548 = vmatpush1.bf16.msra.mxu1 %v3838_v17  ;;  %v4004_v17 = vld [vmem:[#allocation7 + $0x180] ss:$16 sps:$4 sm:$0xff]  }
  0xd6   :  { %1549 = vmatprep.subr.bf16.mxu1 %v3844_v18  ;;  %v4012_v18 = vld [vmem:[#allocation7 + $0x1a4] ss:$16 sps:$4 sm:$0xff]  }
  0xd9   :  { %3366 = vmatmul.mubr.msk.bf16.vlgmr.msra.gmra.mrb[0].mxu0 %vm1324_vm0, %v4469_v19  ;;  %1550 = vmatpush1.bf16.msra.mxu1 %v3842_v20  ;;  %v3890_v20 = vld [vmem:[#allocation5 + $0x468] ss:$16 sps:$4 sm:$0xff]  }
  0xda   :  { %1551 = vmatprep.subr.bf16.mxu1 %v3847_v21  ;;  %2475 = vmatpush1.bf16.msra.mxu0 %v3932_v26  ;;  %v3895_v21 = vld [vmem:[#allocation5 + $0x48c] ss:$16 sps:$4 sm:$0xff]  }
  0xdb   :  { %2476 = vmatprep.subr.bf16.mxu0 %v3940_v28  ;;  %v3907_v26 = vld [vmem:[#allocation5 + $0x50c] ss:$16 sps:$4 sm:$0xff]  }
  0xdc   :  { %v3910_v28 = vld [vmem:[#allocation5 + $0x52c] ss:$16 sps:$4 sm:$0xff]  }
  0xdd   :  { %1552 = vmatpush1.bf16.msra.mxu1 %v3845_v4  ;;  %v3893_v4 = vld [vmem:[#allocation5 + $0x488] ss:$16 sps:$4 sm:$0xff]  }
  0xde   :  { %1553 = vmatprep.subr.bf16.mxu1 %v3850_v22  ;;  %2477 = vmatpush1.bf16.msra.mxu0 %v3938_v31  ;;  %v3896_v22 = vld [vmem:[#allocation5 + $0x4a8] ss:$16 sps:$4 sm:$0xff]   ;;  %v4016_v31 = vld [vmem:[#allocation7 + $0x1c0] ss:$16 sps:$4 sm:$0xff]  }
  0xdf   :  { %2478 = vmatprep.subr.bf16.mxu0 %v3946_v32  ;;  %v3913_v32 = vld [vmem:[#allocation5 + $0x54c] ss:$16 sps:$4 sm:$0xff]  }
  0xe1   :  { %1554 = vmatpush1.bf16.msra.mxu1 %v3848_v23  ;;  %v3901_v23 = vld [vmem:[#allocation5 + $0x4cc] ss:$16 sps:$4 sm:$0xff]  }
  0xe2   :  { %1555 = vmatprep.subr.bf16.mxu1 %v3853_v51  ;;  %2479 = vmatpush1.bf16.msra.mxu0 %v3944_v36  ;;  %v3899_v51 = vld [vmem:[#allocation5 + $0x4c8] ss:$16 sps:$4 sm:$0xff]   ;;  %v4022_v36 = vld [vmem:[#allocation7 + $0x1e0] ss:$16 sps:$4 sm:$0xff]  }
  0xe3   :  { %2480 = vmatprep.subr.bf16.mxu0 %v3952_v37  ;;  %v3916_v37 = vld [vmem:[#allocation5 + $0x56c] ss:$16 sps:$4 sm:$0xff]  }
  0xe5   :  { %1556 = vmatpush1.bf16.msra.mxu1 %v3851_v24  ;;  %v3904_v24 = vld [vmem:[#allocation5 + $0x4ec] ss:$16 sps:$4 sm:$0xff]  }
  0xe6   :  { %1557 = vmatprep.subr.bf16.mxu1 %v3856_v25  ;;  %2481 = vmatpush1.bf16.msra.mxu0 %v3950_v40  ;;  %v3902_v25 = vld [vmem:[#allocation5 + $0x4e8] ss:$16 sps:$4 sm:$0xff]   ;;  %v4030_v40 = vld [vmem:[#allocation7 + $0x204] ss:$16 sps:$4 sm:$0xff]  }
  0xe7   :  { %2482 = vmatprep.subr.bf16.mxu0 %v3958_v41  ;;  %v3917_v41 = vld [vmem:[#allocation5 + $0x588] ss:$16 sps:$4 sm:$0xff]  }
  0xe9   :  { %1558 = vmatpush1.bf16.msra.mxu1 %v3854_v29  ;;  %v4018_v29 = vld [vmem:[#allocation7 + $0x1c4] ss:$16 sps:$4 sm:$0xff]  }
  0xea   :  { %1559 = vmatprep.subr.bf16.mxu1 %v3859_v30  ;;  %2483 = vmatpush1.bf16.msra.mxu0 %v3956_v44  ;;  %v3908_v30 = vld [vmem:[#allocation5 + $0x528] ss:$16 sps:$4 sm:$0xff]   ;;  %v3925_v44 = vld [vmem:[#allocation5 + $0x5cc] ss:$16 sps:$4 sm:$0xff]  }
  0xeb   :  { %2484 = vmatprep.subr.bf16.mxu0 %v3964_v45  ;;  %v3923_v45 = vld [vmem:[#allocation5 + $0x5c8] ss:$16 sps:$4 sm:$0xff]  }
  0xed   :  { %1560 = vmatpush1.bf16.msra.mxu1 %v3857_v33  ;;  %v4024_v33 = vld [vmem:[#allocation7 + $0x1e4] ss:$16 sps:$4 sm:$0xff]  }
  0xee   :  { %1561 = vmatprep.subr.bf16.mxu1 %v3862_v35  ;;  %2485 = vmatpush1.bf16.msra.mxu0 %v3962_v48  ;;  %v3911_v35 = vld [vmem:[#allocation5 + $0x548] ss:$16 sps:$4 sm:$0xff]   ;;  %v3931_v48 = vld [vmem:[#allocation5 + $0x60c] ss:$16 sps:$4 sm:$0xff]  }
  0xef   :  { %2486 = vmatprep.subr.bf16.mxu0 %v3970_v49  ;;  %v3929_v49 = vld [vmem:[#allocation5 + $0x608] ss:$16 sps:$4 sm:$0xff]  }
  0xf1   :  { %1562 = vmatpush1.bf16.msra.mxu1 %v3860_v38  ;;  %v3914_v38 = vld [vmem:[#allocation5 + $0x568] ss:$16 sps:$4 sm:$0xff]  }
  0xf2   :  { %1563 = vmatprep.subr.bf16.mxu1 %v3865_v39  ;;  %2487 = vmatpush1.bf16.msra.mxu0 %v3968_v53  ;;  %v3919_v39 = vld [vmem:[#allocation5 + $0x58c] ss:$16 sps:$4 sm:$0xff]  }
  0xf3   :  { %2488 = vmatprep.subr.bf16.mxu0 %v3976_v54  ;;  %v3943_v53 = vld [vmem:[#allocation7 + $0x2c] ss:$16 sps:$4 sm:$0xff]   ;;  %v3941_v54 = vld [vmem:[#allocation7 + $0x28] ss:$16 sps:$4 sm:$0xff]  }
  0xf5   :  { %1564 = vmatpush1.bf16.msra.mxu1 %v3863_v42  ;;  %v3922_v42 = vld [vmem:[#allocation5 + $0x5ac] ss:$16 sps:$4 sm:$0xff]  }
  0xf6   :  { %1565 = vmatprep.subr.bf16.mxu1 %v3868_v43  ;;  %2489 = vmatpush1.bf16.msra.mxu0 %v3974_v57  ;;  %v3920_v43 = vld [vmem:[#allocation5 + $0x5a8] ss:$16 sps:$4 sm:$0xff]   ;;  %v3955_v57 = vld [vmem:[#allocation7 + $0x6c] ss:$16 sps:$4 sm:$0xff]  }
  0xf7   :  { %2490 = vmatprep.subr.bf16.mxu0 %v3982_v58 }
  0xf9   :  { %1566 = vmatpush1.bf16.msra.mxu1 %v3866_v46  ;;  %v3928_v46 = vld [vmem:[#allocation5 + $0x5ec] ss:$16 sps:$4 sm:$0xff]  }
  0xfa   :  { %1567 = vmatprep.subr.bf16.mxu1 %v3871_v47  ;;  %2491 = vmatpush1.bf16.msra.mxu0 %v3980_v61  ;;  %v3926_v47 = vld [vmem:[#allocation5 + $0x5e8] ss:$16 sps:$4 sm:$0xff]  }
  0xfb   :  { %2492 = vmatprep.subr.bf16.mxu0 %v3988_v62  ;;  %v3959_v61 = vld [vmem:[#allocation7 + $0x88] ss:$16 sps:$4 sm:$0xff]   ;;  %v3967_v62 = vld [vmem:[#allocation7 + $0xac] ss:$16 sps:$4 sm:$0xff]  }
  0xfd   :  { %1568 = vmatpush1.bf16.msra.mxu1 %v3869_v50  ;;  %v3937_v50 = vld [vmem:[#allocation7 + $0xc] ss:$16 sps:$4 sm:$0xff]  }
  0xfe   :  { %1569 = vmatprep.subr.bf16.mxu1 %v3874_v52  ;;  %2493 = vmatpush1.bf16.msra.mxu0 %v3986_v1  ;;  %v3935_v52 = vld [vmem:[#allocation7 + $0x8] ss:$16 sps:$4 sm:$0xff]  }
  0xff   :  { %2494 = vmatprep.subr.bf16.mxu0 %v3994_v2  ;;  %v3971_v1 = vld [vmem:[#allocation7 + $0xc8] ss:$16 sps:$4 sm:$0xff]   ;;  %v3979_v2 = vld [vmem:[#allocation7 + $0xec] ss:$16 sps:$4 sm:$0xff]  }
 0x101   :  { %1570 = vmatpush1.bf16.msra.mxu1 %v3872_v55  ;;  %v3949_v55 = vld [vmem:[#allocation7 + $0x4c] ss:$16 sps:$4 sm:$0xff]  }
 0x102   :  { %1571 = vmatprep.subr.bf16.mxu1 %v3877_v56  ;;  %2495 = vmatpush1.bf16.msra.mxu0 %v3992_v7  ;;  %v3947_v56 = vld [vmem:[#allocation7 + $0x48] ss:$16 sps:$4 sm:$0xff]  }
 0x103   :  { %2496 = vmatprep.subr.bf16.mxu0 %v4000_v8  ;;  %v3983_v7 = vld [vmem:[#allocation7 + $0x108] ss:$16 sps:$4 sm:$0xff]   ;;  %v3991_v8 = vld [vmem:[#allocation7 + $0x12c] ss:$16 sps:$4 sm:$0xff]  }
 0x105   :  { %1572 = vmatpush1.bf16.msra.mxu1 %v3875_v59 }
 0x106   :  { %1573 = vmatprep.subr.bf16.mxu1 %v3880_v60  ;;  %2497 = vmatpush1.bf16.msra.mxu0 %v3998_v12  ;;  %v3995_v12 = vld [vmem:[#allocation7 + $0x148] ss:$16 sps:$4 sm:$0xff]  }
 0x107   :  { %2498 = vmatprep.subr.bf16.mxu0 %v4006_v13  ;;  %v4003_v13 = vld [vmem:[#allocation7 + $0x16c] ss:$16 sps:$4 sm:$0xff]  }
 0x109   :  { %1574 = vmatpush1.bf16.msra.mxu1 %v3878_v63  ;;  %v3965_v63 = vld [vmem:[#allocation7 + $0xa8] ss:$16 sps:$4 sm:$0xff]  }
 0x10a   :  { %1586 = vmatprep.subr.bf16.mxu1 %v3883_v0  ;;  %2499 = vmatpush1.bf16.msra.mxu0 %v4004_v17  ;;  %v3973_v0 = vld [vmem:[#allocation7 + $0xcc] ss:$16 sps:$4 sm:$0xff]   ;;  %v4007_v17 = vld [vmem:[#allocation7 + $0x188] ss:$16 sps:$4 sm:$0xff]  }
 0x10b   :  { %2500 = vmatprep.subr.bf16.mxu0 %v4012_v18  ;;  %v4015_v18 = vld [vmem:[#allocation7 + $0x1ac] ss:$16 sps:$4 sm:$0xff]  }
 0x10c   :  { %1576 = vmatmul.mubr.bf16.vlgmr.msra.gmra.mrb[4].mxu1 %v4456_v5  ;;  %v4010_v5 = vld [vmem:[#allocation7 + $0x1a0] ss:$16 sps:$4 sm:$0xff]  }
 0x10d   :  { %1587 = vmatpush1.bf16.msra.mxu1 %v3881_v3  ;;  %1618 = vmatprep.mubr.bf16.mxu1 %v4460_v34  ;;  %v3898_v34 = vld [vmem:[#allocation5 + $0x4ac] ss:$16 sps:$4 sm:$0xff]   ;;  %v3977_v3 = vld [vmem:[#allocation7 + $0xe8] ss:$16 sps:$4 sm:$0xff]  }
 0x10e   :  { %1588 = vmatprep.subr.bf16.mxu1 %v3886_v6  ;;  %2501 = vmatpush1.bf16.msra.mxu0 %v4010_v5  ;;  %v3985_v6 = vld [vmem:[#allocation7 + $0x10c] ss:$16 sps:$4 sm:$0xff]   ;;  %v4019_v5 = vld [vmem:[#allocation7 + $0x1c8] ss:$16 sps:$4 sm:$0xff]  }
 0x10f   :  { %2502 = vmatprep.subr.bf16.mxu0 %v4018_v29 }
 0x111   :  { %1589 = vmatpush1.bf16.msra.mxu1 %v3884_v9  ;;  %v3989_v9 = vld [vmem:[#allocation7 + $0x128] ss:$16 sps:$4 sm:$0xff]  }
 0x112   :  { %1590 = vmatprep.subr.bf16.mxu1 %v3889_v11  ;;  %2503 = vmatpush1.bf16.msra.mxu0 %v4016_v31  ;;  %v3997_v11 = vld [vmem:[#allocation7 + $0x14c] ss:$16 sps:$4 sm:$0xff]  }
 0x113   :  { %2504 = vmatprep.subr.bf16.mxu0 %v4024_v33 }
 0x115   :  { %1591 = vmatpush1.bf16.msra.mxu1 %v3887_v14  ;;  %v4001_v14 = vld [vmem:[#allocation7 + $0x168] ss:$16 sps:$4 sm:$0xff]  }
 0x116   :  { %1592 = vmatprep.subr.bf16.mxu1 %v3892_v15  ;;  %2505 = vmatpush1.bf16.msra.mxu0 %v4022_v36  ;;  %v4009_v15 = vld [vmem:[#allocation7 + $0x18c] ss:$16 sps:$4 sm:$0xff]  }
 0x117   :  { %2517 = vmatprep.subr.bf16.mxu0 %v4030_v40 }
 0x119   :  { %1593 = vmatpush1.bf16.msra.mxu1 %v3890_v20  ;;  %v4013_v20 = vld [vmem:[#allocation7 + $0x1a8] ss:$16 sps:$4 sm:$0xff]  }
 0x11a   :  { %1594 = vmatprep.subr.bf16.mxu1 %v3895_v21  ;;  %v4021_v21 = vld [vmem:[#allocation7 + $0x1cc] ss:$16 sps:$4 sm:$0xff]  }
 0x11d   :  { %1595 = vmatpush1.bf16.msra.mxu1 %v3893_v4  ;;  %v4027_v4 = vld [vmem:[#allocation7 + $0x1ec] ss:$16 sps:$4 sm:$0xff]  }
 0x11e   :  { %1596 = vmatprep.subr.bf16.mxu1 %v3898_v34  ;;  %v4025_v34 = vld [vmem:[#allocation7 + $0x1e8] ss:$16 sps:$4 sm:$0xff]  }
 0x121   :  { %1597 = vmatpush1.bf16.msra.mxu1 %v3896_v22  ;;  %v4033_v22 = vld [vmem:[#allocation7 + $0x20c] ss:$16 sps:$4 sm:$0xff]  }
 0x122   :  { %1598 = vmatprep.subr.bf16.mxu1 %v3901_v23  ;;  %v289_v23 = vlaneseq }
 0x125   :  { %1599 = vmatpush1.bf16.msra.mxu1 %v3899_v51  ;;  %v4487_v51 = vshrl.u32 %v289_v23, 7  ;;  %v4093_v23 = vld [vmem:[#allocation7 + $0x34c] ss:$16 sps:$4 sm:$0xff]  }
 0x126   :  { %1600 = vmatprep.subr.bf16.mxu1 %v3904_v24 }
 0x127   :  { %v4490_v24 = vsub.s32 0, %v4487_v51 }
 0x129   :  { %1601 = vmatpush1.bf16.msra.mxu1 %v3902_v25  ;;  %v4495_v25 = vld [vmem:[%s4550_s2] sm:$0xf] }
 0x12a   :  { %1602 = vmatprep.subr.bf16.mxu1 %v3907_v26  ;;  %v4498_v26 = vsub.s32 1, %v4487_v51 }
 0x12d   :  { %1603 = vmatpush1.bf16.msra.mxu1 %v3905_v27  ;;  %v292_v27 = vrot.slane %v4495_v25, %v4490_v24 }
 0x12e   :  { %1604 = vmatprep.subr.bf16.mxu1 %v3910_v28  ;;  %v296_v28 = vrot.slane %v4495_v25, %v4498_v26 }
 0x131   :  { %1605 = vmatpush1.bf16.msra.mxu1 %v3908_v30 }
 0x132   :  { %1606 = vmatprep.subr.bf16.mxu1 %v3913_v32 }
 0x135   :  { %1607 = vmatpush1.bf16.msra.mxu1 %v3911_v35 }
 0x136   :  { %1608 = vmatprep.subr.bf16.mxu1 %v3916_v37 }
 0x139   :  { %1609 = vmatpush1.bf16.msra.mxu1 %v3914_v38 }
 0x13a   :  { %1610 = vmatprep.subr.bf16.mxu1 %v3919_v39 }
 0x13d   :  { %1611 = vmatpush1.bf16.msra.mxu1 %v3917_v41 }
 0x13e   :  { %1612 = vmatprep.subr.bf16.mxu1 %v3922_v42 }
 0x141   :  { %1613 = vmatpush1.bf16.msra.mxu1 %v3920_v43 }
 0x142   :  { %1614 = vmatprep.subr.bf16.mxu1 %v3925_v44 }
 0x145   :  { %1615 = vmatpush1.bf16.msra.mxu1 %v3923_v45 }
 0x146   :  { %1616 = vmatprep.subr.bf16.mxu1 %v3928_v46 }
 0x149   :  { %1617 = vmatpush1.bf16.msra.mxu1 %v3926_v47 }
 0x14a   :  { %1629 = vmatprep.subr.bf16.mxu1 %v3931_v48  ;;  %v4028_v48 = vld [vmem:[#allocation7 + $0x200] ss:$16 sps:$4 sm:$0xff]  }
 0x14c   :  { %1619 = vmatmul.mubr.bf16.vlgmr.msra.gmra.mrb[4].mxu1 %v4463_v10 }
 0x14d   :  { %1630 = vmatpush1.bf16.msra.mxu1 %v3929_v49  ;;  %1661 = vmatprep.mubr.bf16.mxu1 %v4348_v16  ;;  %v3953_v16 = vld [vmem:[#allocation7 + $0x68] ss:$16 sps:$4 sm:$0xff]  }
 0x14e   :  { %2560 = vmatprep.subr.bf16.mxu1 %v3937_v50  ;;  %v4031_v49 = vld [vmem:[#allocation7 + $0x208] ss:$16 sps:$4 sm:$0xff]   ;;  %v4036_v50 = vld [vmem:[#allocation7 + $0x224] ss:$16 sps:$4 sm:$0xff]  }
 0x158   :  { %3367 = vmatmul.mubr.msk.bf16.vlgmr.msra.gmra.mrb[4].mxu1 %vm1324_vm0, %v4469_v19  ;;  %v3961_v19 = vld [vmem:[#allocation7 + $0x8c] ss:$16 sps:$4 sm:$0xff]  }
 0x159   :  { %2561 = vmatpush1.bf16.msra.mxu1 %v3935_v52  ;;  %v4039_v52 = vld [vmem:[#allocation7 + $0x22c] ss:$16 sps:$4 sm:$0xff]  }
 0x15a   :  { %2562 = vmatprep.subr.bf16.mxu1 %v3943_v53  ;;  %v4034_v53 = vld [vmem:[#allocation7 + $0x220] ss:$16 sps:$4 sm:$0xff]  }
 0x15d   :  { %2563 = vmatpush1.bf16.msra.mxu1 %v3941_v54  ;;  %v4037_v54 = vld [vmem:[#allocation7 + $0x228] ss:$16 sps:$4 sm:$0xff]  }
 0x15e   :  { %2564 = vmatprep.subr.bf16.mxu1 %v3949_v55  ;;  %v4042_v55 = vld [vmem:[#allocation7 + $0x244] ss:$16 sps:$4 sm:$0xff]  }
 0x15f   :  { %v4479_v58 = vpop.f32.mrb[0].mxu1 }
 0x160   :  { %v4481_v10 = vpop.f32.mrb[1].mxu1  ;;  %v1363_v29 = vadd.f32 %v4479_v58, %v292_v27  ;;  %v4043_v58 = vld [vmem:[#allocation7 + $0x248] ss:$16 sps:$4 sm:$0xff]  }
 0x161   :  { %v4483_v59 = vpop.f32.mrb[2].mxu1  ;;  %2565 = vmatpush1.bf16.msra.mxu1 %v3947_v56  ;;  %v1365_v30 = vadd.f32 %v4481_v10, %v296_v28  ;;  %v4045_v56 = vld [vmem:[#allocation7 + $0x24c] ss:$16 sps:$4 sm:$0xff]   ;;  %v4048_v10 = vld [vmem:[#allocation7 + $0x264] ss:$16 sps:$4 sm:$0xff]  }
 0x162   :  { %v4485_v60 = vpop.f32.mrb[3].mxu1  ;;  %2566 = vmatprep.subr.bf16.mxu1 %v3955_v57  ;;  %v1367_v32 = vadd.f32 %v4483_v59, %v292_v27  ;;  %v4040_v57 = vld [vmem:[#allocation7 + $0x240] ss:$16 sps:$4 sm:$0xff]   ;;  %v4051_v59 = vld [vmem:[#allocation7 + $0x26c] ss:$16 sps:$4 sm:$0xff]  }
 0x163   :  { %v1369_v36 = vadd.f32 %v4485_v60, %v296_v28  ;;  %v4049_v60 = vld [vmem:[#allocation7 + $0x268] ss:$16 sps:$4 sm:$0xff]   ;;  %v4088_v27 = vld [vmem:[#allocation7 + $0x340] ss:$16 sps:$4 sm:$0xff]  }
 0x164   :  { %v4091_v28 = vld [vmem:[#allocation7 + $0x348] ss:$16 sps:$4 sm:$0xff]  }
 0x165   :  { %2567 = vmatpush1.bf16.msra.mxu1 %v3953_v16  ;;  %v4046_v16 = vld [vmem:[#allocation7 + $0x260] ss:$16 sps:$4 sm:$0xff]  }
 0x166   :  { %2568 = vmatprep.subr.bf16.mxu1 %v3961_v19  ;;  %v4054_v19 = vld [vmem:[#allocation7 + $0x284] ss:$16 sps:$4 sm:$0xff]  }
 0x169   :  { %2569 = vmatpush1.bf16.msra.mxu1 %v3959_v61  ;;  %v4057_v61 = vld [vmem:[#allocation7 + $0x28c] ss:$16 sps:$4 sm:$0xff]  }
 0x16a   :  { %2570 = vmatprep.subr.bf16.mxu1 %v3967_v62  ;;  %v4052_v62 = vld [vmem:[#allocation7 + $0x280] ss:$16 sps:$4 sm:$0xff]  }
 0x16d   :  { %2571 = vmatpush1.bf16.msra.mxu1 %v3965_v63  ;;  %v4055_v63 = vld [vmem:[#allocation7 + $0x288] ss:$16 sps:$4 sm:$0xff]  }
 0x16e   :  { %2572 = vmatprep.subr.bf16.mxu1 %v3973_v0  ;;  %v4060_v0 = vld [vmem:[#allocation7 + $0x2a4] ss:$16 sps:$4 sm:$0xff]  }
 0x171   :  { %2573 = vmatpush1.bf16.msra.mxu1 %v3971_v1  ;;  %v4063_v1 = vld [vmem:[#allocation7 + $0x2ac] ss:$16 sps:$4 sm:$0xff]  }
 0x172   :  { %2574 = vmatprep.subr.bf16.mxu1 %v3979_v2  ;;  %v4058_v2 = vld [vmem:[#allocation7 + $0x2a0] ss:$16 sps:$4 sm:$0xff]  }
 0x175   :  { %2575 = vmatpush1.bf16.msra.mxu1 %v3977_v3  ;;  %v4061_v3 = vld [vmem:[#allocation7 + $0x2a8] ss:$16 sps:$4 sm:$0xff]  }
 0x176   :  { %2576 = vmatprep.subr.bf16.mxu1 %v3985_v6  ;;  %v4066_v6 = vld [vmem:[#allocation7 + $0x2c4] ss:$16 sps:$4 sm:$0xff]  }
 0x179   :  { %2577 = vmatpush1.bf16.msra.mxu1 %v3983_v7  ;;  %v4069_v7 = vld [vmem:[#allocation7 + $0x2cc] ss:$16 sps:$4 sm:$0xff]  }
 0x17a   :  { %2578 = vmatprep.subr.bf16.mxu1 %v3991_v8  ;;  %v4064_v8 = vld [vmem:[#allocation7 + $0x2c0] ss:$16 sps:$4 sm:$0xff]  }
 0x17d   :  { %2579 = vmatpush1.bf16.msra.mxu1 %v3989_v9  ;;  %v4067_v9 = vld [vmem:[#allocation7 + $0x2c8] ss:$16 sps:$4 sm:$0xff]  }
 0x17e   :  { %2580 = vmatprep.subr.bf16.mxu1 %v3997_v11  ;;  %v4072_v11 = vld [vmem:[#allocation7 + $0x2e4] ss:$16 sps:$4 sm:$0xff]  }
 0x181   :  { %2581 = vmatpush1.bf16.msra.mxu1 %v3995_v12  ;;  %v4075_v12 = vld [vmem:[#allocation7 + $0x2ec] ss:$16 sps:$4 sm:$0xff]  }
 0x182   :  { %2582 = vmatprep.subr.bf16.mxu1 %v4003_v13  ;;  %v4070_v13 = vld [vmem:[#allocation7 + $0x2e0] ss:$16 sps:$4 sm:$0xff]  }
 0x185   :  { %2583 = vmatpush1.bf16.msra.mxu1 %v4001_v14  ;;  %v4073_v14 = vld [vmem:[#allocation7 + $0x2e8] ss:$16 sps:$4 sm:$0xff]  }
 0x186   :  { %2584 = vmatprep.subr.bf16.mxu1 %v4009_v15  ;;  %v4078_v15 = vld [vmem:[#allocation7 + $0x304] ss:$16 sps:$4 sm:$0xff]  }
 0x189   :  { %2585 = vmatpush1.bf16.msra.mxu1 %v4007_v17  ;;  %v4081_v17 = vld [vmem:[#allocation7 + $0x30c] ss:$16 sps:$4 sm:$0xff]  }
 0x18a   :  { %2586 = vmatprep.subr.bf16.mxu1 %v4015_v18  ;;  %v4076_v18 = vld [vmem:[#allocation7 + $0x300] ss:$16 sps:$4 sm:$0xff]  }
 0x18d   :  { %2587 = vmatpush1.bf16.msra.mxu1 %v4013_v20  ;;  %v4079_v20 = vld [vmem:[#allocation7 + $0x308] ss:$16 sps:$4 sm:$0xff]  }
 0x18e   :  { %2588 = vmatprep.subr.bf16.mxu1 %v4021_v21  ;;  %v4084_v21 = vld [vmem:[#allocation7 + $0x324] ss:$16 sps:$4 sm:$0xff]  }
 0x191   :  { %2589 = vmatpush1.bf16.msra.mxu1 %v4019_v5  ;;  %v4087_v5 = vld [vmem:[#allocation7 + $0x32c] ss:$16 sps:$4 sm:$0xff]  }
 0x192   :  { %2590 = vmatprep.subr.bf16.mxu1 %v4027_v4  ;;  %v4082_v4 = vld [vmem:[#allocation7 + $0x320] ss:$16 sps:$4 sm:$0xff]  }
 0x195   :  { %2591 = vmatpush1.bf16.msra.mxu1 %v4025_v34  ;;  %v4085_v34 = vld [vmem:[#allocation7 + $0x328] ss:$16 sps:$4 sm:$0xff]  }
 0x196   :  { %2603 = vmatprep.subr.bf16.mxu1 %v4033_v22  ;;  %v4090_v22 = vld [vmem:[#allocation7 + $0x344] ss:$16 sps:$4 sm:$0xff]  }
 0x1ac   :  { %v1491_v31 = vpop.f32.mrb[0].mxu0 }
 0x1ad   :  { %v3561_v33 = vadd.f32 %v1491_v31, %v1363_v29  ;;  %v1493_v35 = vpop.f32.mrb[1].mxu0  ;;  %v4096_v29 = vld [vmem:[#allocation7 + $0x364] ss:$16 sps:$4 sm:$0xff]   ;;  %v4094_v31 = vld [vmem:[#allocation7 + $0x360] ss:$16 sps:$4 sm:$0xff]  }
 0x1ae   :  { %v3563_v37 = vadd.f32 %v1493_v35, %v1365_v30  ;;  %v1495_v38 = vpop.f32.mrb[2].mxu0  ;;  %v4099_v30 = vld [vmem:[#allocation7 + $0x36c] ss:$16 sps:$4 sm:$0xff]  }
 0x1af   :  { %v3565_v39 = vadd.f32 %v1495_v38, %v1367_v32  ;;  %v1497_v40 = vpop.f32.mrb[3].mxu0  ;;  %v1672_v42 = vmax.f32 %v3561_v33, 0.0  ;;  %v4097_v32 = vld [vmem:[#allocation7 + $0x368] ss:$16 sps:$4 sm:$0xff]   ;;  %v4102_v33 = vld [vmem:[#allocation7 + $0x384] ss:$16 sps:$4 sm:$0xff]  }
 0x1b0   :  { %v3567_v41 = vadd.f32 %v1497_v40, %v1369_v36  ;;  %v1673_v44 = vmax.f32 %v3563_v37, 0.0  ;;  %v4105_v35 = vld [vmem:[#allocation7 + $0x38c] ss:$16 sps:$4 sm:$0xff]   ;;  %v4100_v36 = vld [vmem:[#allocation7 + $0x380] ss:$16 sps:$4 sm:$0xff]  }
 0x1b1   :  { %v1676_v43 = vmax.f32 %v3565_v39, 0.0  ;;  %v4103_v37 = vld [vmem:[#allocation7 + $0x388] ss:$16 sps:$4 sm:$0xff]   ;;  %v4108_v38 = vld [vmem:[#allocation7 + $0x3a4] ss:$16 sps:$4 sm:$0xff]  }
 0x1b2   :  { %v1677_v45 = vmax.f32 %v3567_v41, 0.0  ;;  %v4111_v39 = vld [vmem:[#allocation7 + $0x3ac] ss:$16 sps:$4 sm:$0xff]   ;;  %v4106_v40 = vld [vmem:[#allocation7 + $0x3a0] ss:$16 sps:$4 sm:$0xff]  }
 0x1b3   :  { %v1680_v46 = vpack.c.bf16 %v1676_v43, %v1672_v42  ;;  %v4109_v41 = vld [vmem:[#allocation7 + $0x3a8] ss:$16 sps:$4 sm:$0xff]   ;;  %v4114_v42 = vld [vmem:[#allocation7 + $0x3c4] ss:$16 sps:$4 sm:$0xff]   ;;  %v4117_v43 = vld [vmem:[#allocation7 + $0x3cc] ss:$16 sps:$4 sm:$0xff]  }
 0x1b4   :  { %v1681_v47 = vpack.c.bf16 %v1677_v45, %v1673_v44  ;;  %v4112_v44 = vld [vmem:[#allocation7 + $0x3c0] ss:$16 sps:$4 sm:$0xff]   ;;  %v4115_v45 = vld [vmem:[#allocation7 + $0x3c8] ss:$16 sps:$4 sm:$0xff]  }
 0x1b6   :  { %2506 = vmatprep.mubr.bf16.mxu0 %v1681_v47  ;;  %2592 = vmatprep.mubr.bf16.mxu1 %v1681_v47  ;;  %v4123_v47 = vld [vmem:[#allocation7 + $0x3ec] ss:$16 sps:$4 sm:$0xff]  }
 0x1b7   :  { %2507 = vmatmul.mubr.bf16.vlgmr.msra.gmra.mrb[4].mxu0 %v1680_v46  ;;  %2593 = vmatmul.mubr.bf16.vlgmr.msra.gmra.mrb[8].mxu1 %v1680_v46  ;;  %v4120_v46 = vld [vmem:[#allocation7 + $0x3e4] ss:$16 sps:$4 sm:$0xff]  }
 0x1b8   :  { %2518 = vmatpush1.bf16.msra.mxu0 %v4028_v48  ;;  %2604 = vmatpush1.bf16.msra.mxu1 %v4031_v49  ;;  %v4118_v48 = vld [vmem:[#allocation7 + $0x3e0] ss:$16 sps:$4 sm:$0xff]   ;;  %v4121_v49 = vld [vmem:[#allocation7 + $0x3e8] ss:$16 sps:$4 sm:$0xff]  }
 0x1b9   :  { %2519 = vmatprep.subr.bf16.mxu0 %v4036_v50  ;;  %2605 = vmatprep.subr.bf16.mxu1 %v4039_v52  ;;  %v4126_v50 = vld [vmem:[#allocation8 + $0x4] ss:$8 sps:$4 sm:$0xff]   ;;  %v299_v52 = vsub.s32 2, %v4487_v51 }
 0x1bc   :  { %2520 = vmatpush1.bf16.msra.mxu0 %v4034_v53  ;;  %2606 = vmatpush1.bf16.msra.mxu1 %v4037_v54  ;;  %v303_v53 = vsub.s32 3, %v4487_v51  ;;  %v300_v54 = vrot.slane %v4495_v25, %v299_v52 }
 0x1bd   :  { %2521 = vmatprep.subr.bf16.mxu0 %v4042_v55  ;;  %2607 = vmatprep.subr.bf16.mxu1 %v4045_v56 }
 0x1be   :  { %v304_v55 = vrot.slane %v4495_v25, %v303_v53  ;;  %v4127_v25 = vld [vmem:[#allocation8 + $0x10] ss:$8 sps:$4 sm:$0xff]  }
 0x1c0   :  { %2522 = vmatpush1.bf16.msra.mxu0 %v4040_v57  ;;  %2608 = vmatpush1.bf16.msra.mxu1 %v4043_v58 }
 0x1c1   :  { %2523 = vmatprep.subr.bf16.mxu0 %v4048_v10  ;;  %2609 = vmatprep.subr.bf16.mxu1 %v4051_v59 }
 0x1c4   :  { %2524 = vmatpush1.bf16.msra.mxu0 %v4046_v16  ;;  %2610 = vmatpush1.bf16.msra.mxu1 %v4049_v60 }
 0x1c5   :  { %2525 = vmatprep.subr.bf16.mxu0 %v4054_v19  ;;  %2611 = vmatprep.subr.bf16.mxu1 %v4057_v61 }
 0x1c8   :  { %2526 = vmatpush1.bf16.msra.mxu0 %v4052_v62  ;;  %2612 = vmatpush1.bf16.msra.mxu1 %v4055_v63 }
 0x1c9   :  { %2527 = vmatprep.subr.bf16.mxu0 %v4060_v0  ;;  %2613 = vmatprep.subr.bf16.mxu1 %v4063_v1 }
 0x1cc   :  { %2528 = vmatpush1.bf16.msra.mxu0 %v4058_v2  ;;  %2614 = vmatpush1.bf16.msra.mxu1 %v4061_v3  ;;  %v4124_v3 = vld [vmem:[#allocation8] ss:$8 sps:$4 sm:$0xff]  }
 0x1cd   :  { %2529 = vmatprep.subr.bf16.mxu0 %v4066_v6  ;;  %2615 = vmatprep.subr.bf16.mxu1 %v4069_v7  ;;  %v4129_v6 = vld [vmem:[#allocation8 + $0x14] ss:$8 sps:$4 sm:$0xff]   ;;  %v4132_v7 = vld [vmem:[#allocation8 + $0x24] ss:$8 sps:$4 sm:$0xff]  }
 0x1d0   :  { %2530 = vmatpush1.bf16.msra.mxu0 %v4064_v8  ;;  %2616 = vmatpush1.bf16.msra.mxu1 %v4067_v9  ;;  %v4130_v8 = vld [vmem:[#allocation8 + $0x20] ss:$8 sps:$4 sm:$0xff]   ;;  %v4135_v9 = vld [vmem:[#allocation8 + $0x34] ss:$8 sps:$4 sm:$0xff]  }
 0x1d1   :  { %2531 = vmatprep.subr.bf16.mxu0 %v4072_v11  ;;  %2617 = vmatprep.subr.bf16.mxu1 %v4075_v12  ;;  %v4133_v11 = vld [vmem:[#allocation8 + $0x30] ss:$8 sps:$4 sm:$0xff]   ;;  %v4138_v12 = vld [vmem:[#allocation8 + $0x44] ss:$8 sps:$4 sm:$0xff]  }
 0x1d4   :  { %2532 = vmatpush1.bf16.msra.mxu0 %v4070_v13  ;;  %2618 = vmatpush1.bf16.msra.mxu1 %v4073_v14  ;;  %v4136_v13 = vld [vmem:[#allocation8 + $0x40] ss:$8 sps:$4 sm:$0xff]   ;;  %v4141_v14 = vld [vmem:[#allocation8 + $0x54] ss:$8 sps:$4 sm:$0xff]  }
 0x1d5   :  { %2533 = vmatprep.subr.bf16.mxu0 %v4078_v15  ;;  %2619 = vmatprep.subr.bf16.mxu1 %v4081_v17  ;;  %v4139_v15 = vld [vmem:[#allocation8 + $0x50] ss:$8 sps:$4 sm:$0xff]   ;;  %v4144_v17 = vld [vmem:[#allocation8 + $0x64] ss:$8 sps:$4 sm:$0xff]  }
 0x1d8   :  { %2534 = vmatpush1.bf16.msra.mxu0 %v4076_v18  ;;  %2620 = vmatpush1.bf16.msra.mxu1 %v4079_v20  ;;  %v4142_v18 = vld [vmem:[#allocation8 + $0x60] ss:$8 sps:$4 sm:$0xff]   ;;  %v4147_v20 = vld [vmem:[#allocation8 + $0x74] ss:$8 sps:$4 sm:$0xff]  }
 0x1d9   :  { %2535 = vmatprep.subr.bf16.mxu0 %v4084_v21  ;;  %2621 = vmatprep.subr.bf16.mxu1 %v4087_v5  ;;  %v4145_v21 = vld [vmem:[#allocation8 + $0x70] ss:$8 sps:$4 sm:$0xff]   ;;  %v4150_v5 = vld [vmem:[#allocation8 + $0x84] ss:$8 sps:$4 sm:$0xff]  }
 0x1dc   :  { %2536 = vmatpush1.bf16.msra.mxu0 %v4082_v4  ;;  %2622 = vmatpush1.bf16.msra.mxu1 %v4085_v34  ;;  %v4148_v4 = vld [vmem:[#allocation8 + $0x80] ss:$8 sps:$4 sm:$0xff]   ;;  %v4153_v34 = vld [vmem:[#allocation8 + $0x94] ss:$8 sps:$4 sm:$0xff]  }
 0x1dd   :  { %2537 = vmatprep.subr.bf16.mxu0 %v4090_v22  ;;  %2623 = vmatprep.subr.bf16.mxu1 %v4093_v23  ;;  %v4151_v22 = vld [vmem:[#allocation8 + $0x90] ss:$8 sps:$4 sm:$0xff]   ;;  %v4156_v23 = vld [vmem:[#allocation8 + $0xa4] ss:$8 sps:$4 sm:$0xff]  }
 0x1e0   :  { %2538 = vmatpush1.bf16.msra.mxu0 %v4088_v27  ;;  %2624 = vmatpush1.bf16.msra.mxu1 %v4091_v28  ;;  %v4154_v27 = vld [vmem:[#allocation8 + $0xa0] ss:$8 sps:$4 sm:$0xff]   ;;  %v4159_v28 = vld [vmem:[#allocation8 + $0xb4] ss:$8 sps:$4 sm:$0xff]  }
 0x1e1   :  { %2539 = vmatprep.subr.bf16.mxu0 %v4096_v29  ;;  %2625 = vmatprep.subr.bf16.mxu1 %v4099_v30  ;;  %v4157_v29 = vld [vmem:[#allocation8 + $0xb0] ss:$8 sps:$4 sm:$0xff]   ;;  %v4162_v30 = vld [vmem:[#allocation8 + $0xc4] ss:$8 sps:$4 sm:$0xff]  }
 0x1e4   :  { %2540 = vmatpush1.bf16.msra.mxu0 %v4094_v31  ;;  %2626 = vmatpush1.bf16.msra.mxu1 %v4097_v32  ;;  %v4160_v31 = vld [vmem:[#allocation8 + $0xc0] ss:$8 sps:$4 sm:$0xff]   ;;  %v4165_v32 = vld [vmem:[#allocation8 + $0xd4] ss:$8 sps:$4 sm:$0xff]  }
 0x1e5   :  { %2541 = vmatprep.subr.bf16.mxu0 %v4102_v33  ;;  %2627 = vmatprep.subr.bf16.mxu1 %v4105_v35  ;;  %v4163_v33 = vld [vmem:[#allocation8 + $0xd0] ss:$8 sps:$4 sm:$0xff]   ;;  %v4168_v35 = vld [vmem:[#allocation8 + $0xe4] ss:$8 sps:$4 sm:$0xff]  }
 0x1e8   :  { %2542 = vmatpush1.bf16.msra.mxu0 %v4100_v36  ;;  %2628 = vmatpush1.bf16.msra.mxu1 %v4103_v37  ;;  %v4166_v36 = vld [vmem:[#allocation8 + $0xe0] ss:$8 sps:$4 sm:$0xff]   ;;  %v4171_v37 = vld [vmem:[#allocation8 + $0xf4] ss:$8 sps:$4 sm:$0xff]  }
 0x1e9   :  { %2543 = vmatprep.subr.bf16.mxu0 %v4108_v38  ;;  %2629 = vmatprep.subr.bf16.mxu1 %v4111_v39  ;;  %v4169_v38 = vld [vmem:[#allocation8 + $0xf0] ss:$8 sps:$4 sm:$0xff]   ;;  %v4174_v39 = vld [vmem:[#allocation8 + $0x104] ss:$8 sps:$4 sm:$0xff]  }
 0x1ec   :  { %2544 = vmatpush1.bf16.msra.mxu0 %v4106_v40  ;;  %2630 = vmatpush1.bf16.msra.mxu1 %v4109_v41  ;;  %v1812_v40 = vld [vmem:[%s4552_s4] sm:$0xf] }
 0x1ed   :  { %2545 = vmatprep.subr.bf16.mxu0 %v4114_v42  ;;  %2631 = vmatprep.subr.bf16.mxu1 %v4117_v43  ;;  %v1817_v41 = vrot.slane %v1812_v40, %v4490_v24  ;;  %v1825_v42 = vrot.slane %v1812_v40, %v299_v52  ;;  %v1821_v43 = vrot.slane %v1812_v40, %v4498_v26 }
 0x1f0   :  { %2546 = vmatpush1.bf16.msra.mxu0 %v4112_v44  ;;  %2632 = vmatpush1.bf16.msra.mxu1 %v4115_v45  ;;  %v1829_v44 = vrot.slane %v1812_v40, %v303_v53  ;;  %v4219_v40 = vld [vmem:[#allocation8 + $0x1f4] ss:$8 sps:$4 sm:$0xff]  }
 0x1f1   :  { %2547 = vmatprep.subr.bf16.mxu0 %v4120_v46  ;;  %2633 = vmatprep.subr.bf16.mxu1 %v4123_v47 }
 0x1f4   :  { %2548 = vmatpush1.bf16.msra.mxu0 %v4118_v48  ;;  %2634 = vmatpush1.bf16.msra.mxu1 %v4121_v49 }
 0x1f5   :  { %3054 = vmatprep.subr.bf16.mxu0 %v4126_v50 }
 0x22b   :  { %v1663_v56 = vpop.f32.mrb[4].mxu1 }
 0x22c   :  { %v3568_v57 = vadd.f32 %v1663_v56, %v300_v54  ;;  %v1665_v58 = vpop.f32.mrb[5].mxu1 }
 0x22d   :  { %v3569_v10 = vadd.f32 %v1665_v58, %v304_v55  ;;  %v1667_v59 = vpop.f32.mrb[6].mxu1 }
 0x22e   :  { %v3570_v16 = vadd.f32 %v1667_v59, %v300_v54  ;;  %v1669_v60 = vpop.f32.mrb[7].mxu1  ;;  %v1674_v61 = vmax.f32 %v3568_v57, 0.0 }
 0x22f   :  { %v3571_v19 = vadd.f32 %v1669_v60, %v304_v55  ;;  %v1675_v63 = vmax.f32 %v3569_v10, 0.0 }
 0x230   :  { %v1678_v62 = vmax.f32 %v3570_v16, 0.0 }
 0x231   :  { %v1679_v0 = vmax.f32 %v3571_v19, 0.0 }
 0x232   :  { %v1682_v1 = vpack.c.bf16 %v1678_v62, %v1674_v61 }
 0x233   :  { %v1683_v2 = vpack.c.bf16 %v1679_v0, %v1675_v63 }
 0x235   :  { %2549 = vmatprep.mubr.bf16.mxu0 %v1683_v2  ;;  %2635 = vmatprep.mubr.bf16.mxu1 %v1683_v2 }
 0x236   :  { %2550 = vmatmul.mubr.bf16.vlgmr.msra.gmra.mrb[4].mxu0 %v1682_v1  ;;  %2636 = vmatmul.mubr.bf16.vlgmr.msra.gmra.mrb[8].mxu1 %v1682_v1 }
 0x237   :  { %3055 = vmatpush1.bf16.msra.mxu0 %v4124_v3 }
 0x238   :  { %3056 = vmatprep.subr.bf16.mxu0 %v4129_v6 }
 0x23b   :  { %3057 = vmatpush1.bf16.msra.mxu0 %v4127_v25 }
 0x23c   :  { %3058 = vmatprep.subr.bf16.mxu0 %v4132_v7  ;;  %v4172_v7 = vld [vmem:[#allocation8 + $0x100] ss:$8 sps:$4 sm:$0xff]  }
 0x23f   :  { %3059 = vmatpush1.bf16.msra.mxu0 %v4130_v8  ;;  %v4177_v8 = vld [vmem:[#allocation8 + $0x114] ss:$8 sps:$4 sm:$0xff]  }
 0x240   :  { %3060 = vmatprep.subr.bf16.mxu0 %v4135_v9  ;;  %v4175_v9 = vld [vmem:[#allocation8 + $0x110] ss:$8 sps:$4 sm:$0xff]  }
 0x243   :  { %3061 = vmatpush1.bf16.msra.mxu0 %v4133_v11  ;;  %v4180_v11 = vld [vmem:[#allocation8 + $0x124] ss:$8 sps:$4 sm:$0xff]  }
 0x244   :  { %3062 = vmatprep.subr.bf16.mxu0 %v4138_v12  ;;  %v4178_v12 = vld [vmem:[#allocation8 + $0x120] ss:$8 sps:$4 sm:$0xff]  }
 0x247   :  { %3063 = vmatpush1.bf16.msra.mxu0 %v4136_v13  ;;  %v4183_v13 = vld [vmem:[#allocation8 + $0x134] ss:$8 sps:$4 sm:$0xff]  }
 0x248   :  { %3064 = vmatprep.subr.bf16.mxu0 %v4141_v14  ;;  %v4181_v14 = vld [vmem:[#allocation8 + $0x130] ss:$8 sps:$4 sm:$0xff]  }
 0x24b   :  { %3065 = vmatpush1.bf16.msra.mxu0 %v4139_v15  ;;  %v4186_v15 = vld [vmem:[#allocation8 + $0x144] ss:$8 sps:$4 sm:$0xff]  }
 0x24c   :  { %3066 = vmatprep.subr.bf16.mxu0 %v4144_v17  ;;  %v4184_v17 = vld [vmem:[#allocation8 + $0x140] ss:$8 sps:$4 sm:$0xff]  }
 0x24f   :  { %3067 = vmatpush1.bf16.msra.mxu0 %v4142_v18  ;;  %v4189_v18 = vld [vmem:[#allocation8 + $0x154] ss:$8 sps:$4 sm:$0xff]  }
 0x250   :  { %3068 = vmatprep.subr.bf16.mxu0 %v4147_v20  ;;  %v4187_v20 = vld [vmem:[#allocation8 + $0x150] ss:$8 sps:$4 sm:$0xff]  }
 0x253   :  { %3069 = vmatpush1.bf16.msra.mxu0 %v4145_v21  ;;  %v4192_v21 = vld [vmem:[#allocation8 + $0x164] ss:$8 sps:$4 sm:$0xff]  }
 0x254   :  { %3070 = vmatprep.subr.bf16.mxu0 %v4150_v5  ;;  %v4190_v5 = vld [vmem:[#allocation8 + $0x160] ss:$8 sps:$4 sm:$0xff]  }
 0x257   :  { %3071 = vmatpush1.bf16.msra.mxu0 %v4148_v4  ;;  %v4195_v4 = vld [vmem:[#allocation8 + $0x174] ss:$8 sps:$4 sm:$0xff]  }
 0x258   :  { %3072 = vmatprep.subr.bf16.mxu0 %v4153_v34  ;;  %v4193_v34 = vld [vmem:[#allocation8 + $0x170] ss:$8 sps:$4 sm:$0xff]  }
 0x25b   :  { %3073 = vmatpush1.bf16.msra.mxu0 %v4151_v22  ;;  %v4198_v22 = vld [vmem:[#allocation8 + $0x184] ss:$8 sps:$4 sm:$0xff]  }
 0x25c   :  { %3074 = vmatprep.subr.bf16.mxu0 %v4156_v23  ;;  %v4196_v23 = vld [vmem:[#allocation8 + $0x180] ss:$8 sps:$4 sm:$0xff]  }
 0x25f   :  { %3075 = vmatpush1.bf16.msra.mxu0 %v4154_v27  ;;  %v4201_v27 = vld [vmem:[#allocation8 + $0x194] ss:$8 sps:$4 sm:$0xff]  }
 0x260   :  { %3076 = vmatprep.subr.bf16.mxu0 %v4159_v28  ;;  %v4199_v28 = vld [vmem:[#allocation8 + $0x190] ss:$8 sps:$4 sm:$0xff]  }
 0x263   :  { %3077 = vmatpush1.bf16.msra.mxu0 %v4157_v29  ;;  %v4204_v29 = vld [vmem:[#allocation8 + $0x1a4] ss:$8 sps:$4 sm:$0xff]  }
 0x264   :  { %3078 = vmatprep.subr.bf16.mxu0 %v4162_v30  ;;  %v4202_v30 = vld [vmem:[#allocation8 + $0x1a0] ss:$8 sps:$4 sm:$0xff]  }
 0x267   :  { %3079 = vmatpush1.bf16.msra.mxu0 %v4160_v31  ;;  %v4207_v31 = vld [vmem:[#allocation8 + $0x1b4] ss:$8 sps:$4 sm:$0xff]  }
 0x268   :  { %3080 = vmatprep.subr.bf16.mxu0 %v4165_v32  ;;  %v4205_v32 = vld [vmem:[#allocation8 + $0x1b0] ss:$8 sps:$4 sm:$0xff]  }
 0x26b   :  { %3081 = vmatpush1.bf16.msra.mxu0 %v4163_v33  ;;  %v4210_v33 = vld [vmem:[#allocation8 + $0x1c4] ss:$8 sps:$4 sm:$0xff]  }
 0x26c   :  { %3082 = vmatprep.subr.bf16.mxu0 %v4168_v35  ;;  %v4208_v35 = vld [vmem:[#allocation8 + $0x1c0] ss:$8 sps:$4 sm:$0xff]  }
 0x26f   :  { %3083 = vmatpush1.bf16.msra.mxu0 %v4166_v36  ;;  %v4213_v36 = vld [vmem:[#allocation8 + $0x1d4] ss:$8 sps:$4 sm:$0xff]  }
 0x270   :  { %3084 = vmatprep.subr.bf16.mxu0 %v4171_v37  ;;  %v4211_v37 = vld [vmem:[#allocation8 + $0x1d0] ss:$8 sps:$4 sm:$0xff]  }
 0x273   :  { %3085 = vmatpush1.bf16.msra.mxu0 %v4169_v38  ;;  %v4216_v38 = vld [vmem:[#allocation8 + $0x1e4] ss:$8 sps:$4 sm:$0xff]  }
 0x274   :  { %3097 = vmatprep.subr.bf16.mxu0 %v4174_v39  ;;  %v4214_v39 = vld [vmem:[#allocation8 + $0x1e0] ss:$8 sps:$4 sm:$0xff]  }
 0x309   :  { %v2551_v45 = vpop.f32.mrb[4].mxu0  ;;  %v2637_v46 = vpop.f32.mrb[8].mxu1 }
 0x30a   :  { %v3572_v47 = vadd.f32 %v2551_v45, %v1817_v41  ;;  %v3576_v48 = vadd.f32 %v2637_v46, %v1825_v42  ;;  %v2553_v49 = vpop.f32.mrb[5].mxu0  ;;  %v2639_v50 = vpop.f32.mrb[9].mxu1 }
 0x30b   :  { %v3573_v54 = vadd.f32 %v2553_v49, %v1821_v43  ;;  %v3577_v55 = vadd.f32 %v2639_v50, %v1829_v44  ;;  %v2555_v56 = vpop.f32.mrb[6].mxu0  ;;  %v2641_v57 = vpop.f32.mrb[10].mxu1 }
 0x30c   :  { %v3574_v58 = vadd.f32 %v2555_v56, %v1817_v41  ;;  %v3578_v10 = vadd.f32 %v2641_v57, %v1825_v42  ;;  %v2557_v59 = vpop.f32.mrb[7].mxu0  ;;  %v2643_v16 = vpop.f32.mrb[11].mxu1  ;;  %v2646_v19 = vmax.f32 %v3572_v47, 0.0  ;;  %v2648_v61 = vmax.f32 %v3576_v48, 0.0  ;;  %v4217_v41 = vld [vmem:[#allocation8 + $0x1f0] ss:$8 sps:$4 sm:$0xff]  }
 0x30d   :  { %v3575_v52 = vadd.f32 %v2557_v59, %v1821_v43  ;;  %v3579_v60 = vadd.f32 %v2643_v16, %v1829_v44  ;;  %v2647_v62 = vmax.f32 %v3573_v54, 0.0  ;;  %v2649_v63 = vmax.f32 %v3577_v55, 0.0  ;;  %v2722_v42 = vld [vmem:[%s4554_s6] sm:$0x3]  ;;  %s4308_s6 = scalar_lea.vmem %s3150_s13, 512 }
 0x30e   :  { %v2650_v51 = vmax.f32 %v3574_v58, 0.0  ;;  %v2652_v53 = vmax.f32 %v3578_v10, 0.0  ;;  %v2727_v43 = vrot.slane %v2722_v42, %v4490_v24  ;;  %v2731_v44 = vrot.slane %v2722_v42, %v4498_v26  ;;  %p4309_p4 = scmp.ne.s32.totalorder %s3150_s13, %s4308_s6  ;;  %p4314_p6 = scmp.lt.s32.totalorder %s4308_s6, %s4308_s6 }
 0x30f   :  { %v2651_v0 = vmax.f32 %v3575_v52, 0.0  ;;  %v2653_v1 = vmax.f32 %v3579_v60, 0.0 }
 0x310   :  { %v2654_v2 = vpack.c.bf16 %v2650_v51, %v2646_v19  ;;  %v4525_v3 = vpack.c.bf16 %v2652_v53, %v2648_v61  ;;  %p4315_p7 = por %p4314_p6, %p4313_p5 }
 0x311   :  { %v2655_v6 = vpack.c.bf16 %v2651_v0, %v2647_v62  ;;  %v2657_v25 = vpack.c.bf16 %v2653_v1, %v2649_v63 }
 0x312   :  { %p4316_p8 = pnand %p4315_p7, %p4309_p4 }
 0x313   :  { %3086 = vmatprep.mubr.bf16.mxu0 %v2655_v6 }
 0x314   :  { %3087 = vmatmul.mubr.bf16.vlgmr.msra.gmra.mrb[8].mxu0 %v2654_v2 }
 0x315   :  { %3098 = vmatpush1.bf16.msra.mxu0 %v4172_v7  ;;  %3129 = vmatprep.mubr.bf16.mxu0 %v2657_v25 }
 0x316   :  { %3099 = vmatprep.subr.bf16.mxu0 %v4177_v8 }
 0x319   :  { %3100 = vmatpush1.bf16.msra.mxu0 %v4175_v9 }
 0x31a   :  { %3101 = vmatprep.subr.bf16.mxu0 %v4180_v11 }
 0x31d   :  { %3102 = vmatpush1.bf16.msra.mxu0 %v4178_v12 }
 0x31e   :  { %3103 = vmatprep.subr.bf16.mxu0 %v4183_v13 }
 0x321   :  { %3104 = vmatpush1.bf16.msra.mxu0 %v4181_v14 }
 0x322   :  { %3105 = vmatprep.subr.bf16.mxu0 %v4186_v15 }
 0x325   :  { %3106 = vmatpush1.bf16.msra.mxu0 %v4184_v17 }
 0x326   :  { %3107 = vmatprep.subr.bf16.mxu0 %v4189_v18 }
 0x329   :  { %3108 = vmatpush1.bf16.msra.mxu0 %v4187_v20 }
 0x32a   :  { %3109 = vmatprep.subr.bf16.mxu0 %v4192_v21 }
 0x32d   :  { %3110 = vmatpush1.bf16.msra.mxu0 %v4190_v5 }
 0x32e   :  { %3111 = vmatprep.subr.bf16.mxu0 %v4195_v4 }
 0x331   :  { %3112 = vmatpush1.bf16.msra.mxu0 %v4193_v34 }
 0x332   :  { %3113 = vmatprep.subr.bf16.mxu0 %v4198_v22 }
 0x335   :  { %3114 = vmatpush1.bf16.msra.mxu0 %v4196_v23 }
 0x336   :  { %3115 = vmatprep.subr.bf16.mxu0 %v4201_v27 }
 0x339   :  { %3116 = vmatpush1.bf16.msra.mxu0 %v4199_v28 }
 0x33a   :  { %3117 = vmatprep.subr.bf16.mxu0 %v4204_v29 }
 0x33d   :  { %3118 = vmatpush1.bf16.msra.mxu0 %v4202_v30 }
 0x33e   :  { %3119 = vmatprep.subr.bf16.mxu0 %v4207_v31 }
 0x341   :  { %3120 = vmatpush1.bf16.msra.mxu0 %v4205_v32 }
 0x342   :  { %3121 = vmatprep.subr.bf16.mxu0 %v4210_v33 }
 0x345   :  { %3122 = vmatpush1.bf16.msra.mxu0 %v4208_v35 }
 0x346   :  { %3123 = vmatprep.subr.bf16.mxu0 %v4213_v36 }
 0x349   :  { %3124 = vmatpush1.bf16.msra.mxu0 %v4211_v37 }
 0x34a   :  { %3125 = vmatprep.subr.bf16.mxu0 %v4216_v38 }
 0x34d   :  { %3126 = vmatpush1.bf16.msra.mxu0 %v4214_v39 }
 0x34e   :  { %3127 = vmatprep.subr.bf16.mxu0 %v4219_v40 }
 0x351   :  { %3128 = vmatpush1.bf16.msra.mxu0 %v4217_v41 }
 0x354   :  { %3130 = vmatmul.mubr.bf16.vlgmr.msra.gmra.mrb[8].mxu0 %v4525_v3 }
 0x427   :  { %v3131_v45 = vpop.f32.mrb[8].mxu0 }
 0x428   :  { %v3580_v46 = vadd.f32 %v3131_v45, %v2727_v43  ;;  %v3133_v47 = vpop.f32.mrb[9].mxu0 }
 0x429   :  { %v3581_v48 = vadd.f32 %v3133_v47, %v2731_v44  ;;  %v3135_v49 = vpop.f32.mrb[10].mxu0 }
 0x42a   :  { %3140 = vst [vmem:[#allocation10] sm:$0xff] %v3580_v46  ;;  %v3582_v50 = vadd.f32 %v3135_v49, %v2727_v43  ;;  %v3137_v54 = vpop.f32.mrb[11].mxu0 }
 0x42b   :  { %3141 = vst [vmem:[#allocation10 + $0x8] sm:$0xff] %v3581_v48  ;;  %v3583_v55 = vadd.f32 %v3137_v54, %v2731_v44 }
 0x42c   :  { %3142 = vst [vmem:[#allocation10 + $0x10] sm:$0xff] %v3582_v50 }
 0x42d   :  { %3143 = vst [vmem:[#allocation10 + $0x18] sm:$0xff] %v3583_v55 }
 0x42e   :  { %4319 = shalt.err (!%p4316_p8)
}
 0x42f   :  { %s4320_s17 = scalar_lea.hbm %s4555_s7, 512 }
 0x430   :  { %p4321_p9 = scmp.ne.s32.totalorder %s4555_s7, %s4320_s17  ;;  %p4324_p10 = scmp.lt.u32.totalorder %s4320_s17, %s4555_s7 }
 0x432   :  { %p4326_p11 = pnand %p4324_p10, %p4321_p9 }
 0x434   :  { %4329 = shalt.err (!%p4326_p11)
}
 0x435   :  { %3155 = dma.vmem_to_hbm [thread:$0]  %s3150_s13, 512, %s4555_s7, [#allocation4], %s4339_s11, %s4339_s11, %s4340_s12  }
 0x436   :  { %4336 = dma.done.wait [#allocation4], 512  }
 0x437   :  { %4337 = vsyncadd [#allocation4], 4294966784 }
 0x438   :  { %3159 = vsyncpa [#allocation3], 1 }
 0x439   :  { %3160 = vsyncpa [#allocation6], 1 }
 0x43a   :  { %3161 = vsyncpa [#allocation9], 1 }
 0x43b   :  { %3162 = vsyncpa [#allocation4], 1 }

</bundles_post_ra>
